<compile_context>
chip_gen: v5e
topology: v5e:2x2
jax: 0.10.0
libtpu: 0.0.40
codegen_flags: <defaults>
</compile_context>

<pallas_src>
import jax
import jax.numpy as jnp
from jax.experimental import pallas as pl
from jax.experimental.pallas import tpu as pltpu

# ---------------- model dimensions (consistent with the forward) -----------
B = 2            # batch ('img': (B, 1, H, W)); kept small for the test
C_IN = 1
IMG = 56         # image H = W
PATCH = 8        # 7x7 feature map -> matches nn.AvgPool2d((7, 7), 1)
P = (IMG // PATCH) ** 2          # 49 spatial positions
D = C_IN * PATCH * PATCH         # 64 patch dim
FEAT = 128                       # backbone feature channels / uv in_features
UV_OUT = 42                      # 21 keypoints * 2
UV_PAD = 128                     # lane-dense uv output
N_VERTS = 778
N_JOINTS = 21
VFLAT = N_VERTS * 3              # 2334
JFLAT = N_JOINTS * 3             # 63
J_PAD = 128                      # lane-dense joints output
ACT = FEAT + UV_OUT + 1          # 171: fused [gf, uv, 1] activation
ACT_PAD = 176                    # 11 * 16 -> bf16 sublane-packed


def _num_mesh_tiles():
    """2 column tiles (one per TensorCore) on v7x-class chips, else 1."""
    try:
        dev = jax.devices()[0]
        kind = dev.device_kind.lower()
        if dev.platform == "tpu" and ("v7" in kind or "7x" in kind):
            return 2
    except Exception:
        pass
    return 1


N_TILES = _num_mesh_tiles()
VFLAT_PAD = 2560 if N_TILES == 2 else 2432   # 20*128 vs 19*128 (both >= 2334)
NV_T = VFLAT_PAD // N_TILES                  # 1280 or 2432 (multiples of 128)


# ---------------------------- Pallas kernels --------------------------------
def head_kernel(x_ref, pool_ref, w_pe_ref, b_pe_ref, w_uv_ref, b_uv_ref,
                w_j_ref, b_j_ref, gf_ref, uv_ref, joints_ref):
    # `image/255 - 0.5` is pre-folded into w_pe / b_pe (see init_params).
    # TODO(synk): timm/hiera backbone is external; stand-in backbone is a
    # single patch-embedding linear + ReLU.
    feats = jnp.dot(x_ref[...], w_pe_ref[...],
                    preferred_element_type=jnp.float32) + b_pe_ref[...]
    feats = jnp.maximum(feats, 0.0)                          # (B*P, FEAT)

    # nn.AvgPool2d((7,7),1) on a 7x7 map + squeeze == mean over the 49 patch
    # positions, expressed as a tiny pooling matmul (stays on MXU).
    gf = jnp.dot(pool_ref[...], feats,
                 preferred_element_type=jnp.float32)         # (B, FEAT)

    # keypoints_2d_head = nn.Linear(in_features, out_features) (lane-padded)
    uv = jnp.dot(gf, w_uv_ref[...],
                 preferred_element_type=jnp.float32) + b_uv_ref[...]  # (B,128)

    gf_ref[...] = gf.astype(jnp.bfloat16)                    # bf16 for mesh
    uv_ref[...] = uv

    # mesh_to_joints(vertices): joint regressor constant-folded into the
    # (linear) mesh head -> joints directly from the fused [gf, uv] features.
    act = jnp.concatenate([gf, uv], axis=-1)                 # (B, 256) aligned
    joints_ref[...] = jnp.dot(act, w_j_ref[...],
                              preferred_element_type=jnp.float32) + b_j_ref[...]


def mesh_kernel(act_ref, w_m_ref, verts_ref):
    # TODO(synk): MeshHead (attention/identity/conv blocks) is external;
    # stand-in mesh head = one fused linear over [gf, uv, 1] -> vertices.
    verts_ref[...] = jnp.dot(act_ref[...], w_m_ref[...],
                             preferred_element_type=jnp.float32)   # (B, NV_T)


# ------------------------------ wrapper -------------------------------------
def _patchify_nchw(image):
    """(B, C, H, W) -> (B*P, C*ph*pw) patch tokens (pure-JAX glue)."""
    b, c, h, w = image.shape
    gh, gw = h // PATCH, w // PATCH
    x = image.reshape(b, c, gh, PATCH, gw, PATCH)
    x = jnp.transpose(x, (0, 2, 4, 1, 3, 5))          # (B, gh, gw, C, ph, pw)
    return x.reshape(b * gh * gw, c * PATCH * PATCH)  # (B*P, D)


def _pad_to(a, rows, cols):
    return jnp.pad(a, ((0, rows - a.shape[0]), (0, cols - a.shape[1])))


def init_params(key):
    ks = jax.random.split(key, 6)
    w_pe = jax.random.normal(ks[0], (D, FEAT), jnp.float32) * 0.02
    b_pe = jnp.zeros((1, FEAT), jnp.float32)
    w_uv = jax.random.normal(ks[1], (FEAT, UV_OUT), jnp.float32) * 0.02
    b_uv = jnp.zeros((1, UV_OUT), jnp.float32)
    w_mg = jax.random.normal(ks[2], (FEAT, VFLAT), jnp.float32) * 0.02
    w_mu = jax.random.normal(ks[3], (UV_OUT, VFLAT), jnp.float32) * 0.02
    b_m = jnp.zeros((1, VFLAT), jnp.float32)

    # Fold `x/255 - 0.5` into the patch-embed linear.
    w_pe_f = w_pe / 255.0
    b_pe_f = b_pe - 0.5 * jnp.sum(w_pe, axis=0, keepdims=True)

    # Pooling matrix: mean over the P=49 positions of each batch element.
    pool = jnp.kron(jnp.eye(B, dtype=jnp.float32),
                    jnp.ones((1, P), jnp.float32) / P)          # (B, B*P)

    # TODO(synk): MANO joint-regressor weights are a checkpoint asset; use a
    # deterministic row-normalized random regressor of the correct shape.
    j_reg = jax.random.uniform(ks[4], (N_JOINTS, N_VERTS), jnp.float32)
    j_reg = j_reg / jnp.sum(j_reg, axis=1, keepdims=True)       # (21, 778)
    j_reg_flat = jnp.kron(j_reg.T, jnp.eye(3, dtype=jnp.float32))  # (2334, 63)

    # Constant-fold the joint regressor into the (linear) mesh head, in f32,
    # then fuse [w_jg; w_ju(zero-padded rows); ] into one (256, 128) weight.
    w_jg = w_mg @ j_reg_flat                                    # (FEAT, 63)
    w_ju = w_mu @ j_reg_flat                                    # (42, 63)
    b_j = b_m @ j_reg_flat                                      # (1, 63)
    w_j = jnp.concatenate([
        _pad_to(w_jg, FEAT, J_PAD),
        _pad_to(w_ju, UV_PAD, J_PAD),                           # rows 42..127 = 0
    ], axis=0)                                                  # (256, 128) f32
    b_j_p = _pad_to(b_j, 1, J_PAD)

    # Fused bf16 mesh weight: rows = [w_mg(128); w_mu(42); b_m(1); 0-pad(5)],
    # columns lane-padded to VFLAT_PAD.  One matmul per tile in the kernel.
    w_m = jnp.concatenate([
        _pad_to(w_mg, FEAT, VFLAT_PAD),
        _pad_to(w_mu, UV_OUT, VFLAT_PAD),
        _pad_to(b_m, 1, VFLAT_PAD),
        jnp.zeros((ACT_PAD - ACT, VFLAT_PAD), jnp.float32),
    ], axis=0).astype(jnp.bfloat16)                             # (176, VFLAT_PAD)

    return {
        'pool': pool,
        'w_pe': w_pe_f, 'b_pe': b_pe_f,
        'w_uv': _pad_to(w_uv, FEAT, UV_PAD),
        'b_uv': _pad_to(b_uv, 1, UV_PAD),
        'w_j': w_j, 'b_j': b_j_p,
        'w_m': w_m,
    }


@jax.jit
def handnet_forward(image, params):
    x2d = _patchify_nchw(image)                                 # (B*P, D)

    const = lambda block: pl.BlockSpec(block, lambda i: (0, 0))

    # ---- head kernel: backbone stand-in, pooling, uv, joints (one step) ----
    head_spec = pltpu.PrefetchScalarGridSpec(
        num_scalar_prefetch=0,
        grid=(1,),
        in_specs=[
            const((B * P, D)),                                   # x2d
            const((B, B * P)),                                   # pool
            const((D, FEAT)),                                    # w_pe
            const((1, FEAT)),                                    # b_pe
            const((FEAT, UV_PAD)),                               # w_uv
            const((1, UV_PAD)),                                  # b_uv
            const((FEAT + UV_PAD, J_PAD)),                       # w_j (fused)
            const((1, J_PAD)),                                   # b_j
        ],
        out_specs=(
            const((B, FEAT)),                                    # gf (bf16)
            const((B, UV_PAD)),                                  # uv (padded)
            const((B, J_PAD)),                                   # joints (pad)
        ),
    )
    gf_b16, uv_pad, joints_pad = pl.pallas_call(
        head_kernel,
        out_shape=(
            jax.ShapeDtypeStruct((B, FEAT), jnp.bfloat16),
            jax.ShapeDtypeStruct((B, UV_PAD), jnp.float32),
            jax.ShapeDtypeStruct((B, J_PAD), jnp.float32),
        ),
        grid_spec=head_spec,
        compiler_params=pltpu.CompilerParams(
            dimension_semantics=("arbitrary",),
            vmem_limit_bytes=16 * 1024 * 1024),
        cost_estimate=pl.CostEstimate(
            flops=2_100_000, transcendentals=0, bytes_accessed=320_000),
    )(x2d, params['pool'], params['w_pe'], params['b_pe'],
      params['w_uv'], params['b_uv'], params['w_j'], params['b_j'])

    # Tiny XLA glue: fused bf16 activation [gf, uv, 1] (built once, no per-tile
    # casts inside the mesh kernel).
    uv = uv_pad[:, :UV_OUT]
    act = jnp.concatenate(
        [gf_b16,
         uv.astype(jnp.bfloat16),
         jnp.ones((B, 1), jnp.bfloat16),
         jnp.zeros((B, ACT_PAD - ACT), jnp.bfloat16)], axis=-1)  # (B, 176)

    # ---- mesh kernel: one bf16 matmul per column tile, parallel grid --------
    mesh_spec = pltpu.PrefetchScalarGridSpec(
        num_scalar_prefetch=0,
        grid=(N_TILES,),
        in_specs=[
            pl.BlockSpec((B, ACT_PAD), lambda i: (0, 0)),        # act
            pl.BlockSpec((ACT_PAD, NV_T), lambda i: (0, i)),     # w_m tile
        ],
        out_specs=pl.BlockSpec((B, NV_T), lambda i: (0, i)),     # verts tile
    )
    verts_pad = pl.pallas_call(
        mesh_kernel,
        out_shape=jax.ShapeDtypeStruct((B, VFLAT_PAD), jnp.float32),
        grid_spec=mesh_spec,
        compiler_params=pltpu.CompilerParams(
            dimension_semantics=("parallel",),                   # 2 TCs on v7x
            vmem_limit_bytes=16 * 1024 * 1024),
        cost_estimate=pl.CostEstimate(
            flops=2 * B * ACT_PAD * VFLAT_PAD, transcendentals=0,
            bytes_accessed=ACT_PAD * VFLAT_PAD * 2 + B * VFLAT_PAD * 4),
    )(act, params['w_m'])

    return {
        'uv': uv,                                                # (B, 42)
        'joints': joints_pad[:, :JFLAT].reshape(B, N_JOINTS, 3), # (B, 21, 3)
        'vertices': verts_pad[:, :VFLAT].reshape(B, N_VERTS, 3), # (B, 778, 3)
    }


if __name__ == "__main__":
    key = jax.random.PRNGKey(0)
    k_img, k_params = jax.random.split(key)
    # synthetic uint8-range image, NCHW like the PyTorch module expects
    image = jax.random.uniform(k_img, (B, C_IN, IMG, IMG),
                               jnp.float32, 0.0, 255.0)
    params = init_params(k_params)

    out = handnet_forward(image, params)
    jax.block_until_ready(out)

    assert out['uv'].shape == (B, UV_OUT)
    assert out['joints'].shape == (B, N_JOINTS, 3)
    assert out['vertices'].shape == (B, N_VERTS, 3)
    print("KERNEL_OK")
</pallas_src>

<mosaic_0001>
module attributes {stable_mosaic.version = 11 : i64} {
  func.func @head_kernel(%arg0: i32, %arg1: memref<98x64xf32, #tpu.memory_space<vmem>>, %arg2: memref<2x98xf32, #tpu.memory_space<vmem>>, %arg3: memref<64x128xf32, #tpu.memory_space<vmem>>, %arg4: memref<1x128xf32, #tpu.memory_space<vmem>>, %arg5: memref<128x128xf32, #tpu.memory_space<vmem>>, %arg6: memref<1x128xf32, #tpu.memory_space<vmem>>, %arg7: memref<256x128xf32, #tpu.memory_space<vmem>>, %arg8: memref<1x128xf32, #tpu.memory_space<vmem>>, %arg9: memref<2x128xbf16, #tpu.memory_space<vmem>>, %arg10: memref<2x128xf32, #tpu.memory_space<vmem>>, %arg11: memref<2x128xf32, #tpu.memory_space<vmem>>) attributes {dimension_semantics = [#tpu.dimension_semantics<arbitrary>], iteration_bounds = array<i64: 1>, scalar_prefetch = 0 : i64, scratch_operands = 0 : i64, tpu.core_type = #tpu.core_type<tc>, window_params = [{pipeline_mode = #tpu.pipeline_mode<synchronous>, transform_indices = @transform_0, window_bounds = array<i64: 98, 64>}, {pipeline_mode = #tpu.pipeline_mode<synchronous>, transform_indices = @transform_1, window_bounds = array<i64: 2, 98>}, {pipeline_mode = #tpu.pipeline_mode<synchronous>, transform_indices = @transform_2, window_bounds = array<i64: 64, 128>}, {pipeline_mode = #tpu.pipeline_mode<synchronous>, transform_indices = @transform_3, window_bounds = array<i64: 1, 128>}, {pipeline_mode = #tpu.pipeline_mode<synchronous>, transform_indices = @transform_4, window_bounds = array<i64: 128, 128>}, {pipeline_mode = #tpu.pipeline_mode<synchronous>, transform_indices = @transform_5, window_bounds = array<i64: 1, 128>}, {pipeline_mode = #tpu.pipeline_mode<synchronous>, transform_indices = @transform_6, window_bounds = array<i64: 256, 128>}, {pipeline_mode = #tpu.pipeline_mode<synchronous>, transform_indices = @transform_7, window_bounds = array<i64: 1, 128>}, {pipeline_mode = #tpu.pipeline_mode<synchronous>, transform_indices = @transform_8, window_bounds = array<i64: 2, 128>}, {pipeline_mode = #tpu.pipeline_mode<synchronous>, transform_indices = @transform_9, window_bounds = array<i64: 2, 128>}, {pipeline_mode = #tpu.pipeline_mode<synchronous>, transform_indices = @transform_10, window_bounds = array<i64: 2, 128>}]} {
    %c0 = arith.constant 0 : index
    %c0_0 = arith.constant 0 : index
    %0 = vector.load %arg1[%c0, %c0_0] : memref<98x64xf32, #tpu.memory_space<vmem>>, vector<98x64xf32>
    %c0_1 = arith.constant 0 : index
    %c0_2 = arith.constant 0 : index
    %1 = vector.load %arg3[%c0_1, %c0_2] : memref<64x128xf32, #tpu.memory_space<vmem>>, vector<64x128xf32>
    %cst = arith.constant dense<0.000000e+00> : vector<98x128xf32>
    %2 = tpu.matmul %0, %1, %cst {dimension_numbers = #tpu.dot_dimension_numbers<[1], [0], [0], [1], [0, 0, 1, 1], [], []>} : vector<98x64xf32>, vector<64x128xf32>, vector<98x128xf32> -> vector<98x128xf32>
    %c0_3 = arith.constant 0 : index
    %c0_4 = arith.constant 0 : index
    %3 = vector.load %arg4[%c0_3, %c0_4] : memref<1x128xf32, #tpu.memory_space<vmem>>, vector<1x128xf32>
    %4 = vector.broadcast %3 : vector<1x128xf32> to vector<98x128xf32>
    %5 = arith.addf %2, %4 : vector<98x128xf32>
    %cst_5 = arith.constant 0.000000e+00 : f32
    %6 = vector.broadcast %cst_5 : f32 to vector<98x128xf32>
    %7 = arith.maximumf %5, %6 : vector<98x128xf32>
    %c0_6 = arith.constant 0 : index
    %c0_7 = arith.constant 0 : index
    %8 = vector.load %arg2[%c0_6, %c0_7] : memref<2x98xf32, #tpu.memory_space<vmem>>, vector<2x98xf32>
    %cst_8 = arith.constant dense<0.000000e+00> : vector<2x128xf32>
    %9 = tpu.matmul %8, %7, %cst_8 {dimension_numbers = #tpu.dot_dimension_numbers<[1], [0], [0], [1], [0, 0, 1, 1], [], []>} : vector<2x98xf32>, vector<98x128xf32>, vector<2x128xf32> -> vector<2x128xf32>
    %c0_9 = arith.constant 0 : index
    %c0_10 = arith.constant 0 : index
    %10 = vector.load %arg5[%c0_9, %c0_10] : memref<128x128xf32, #tpu.memory_space<vmem>>, vector<128x128xf32>
    %cst_11 = arith.constant dense<0.000000e+00> : vector<2x128xf32>
    %11 = tpu.matmul %9, %10, %cst_11 {dimension_numbers = #tpu.dot_dimension_numbers<[1], [0], [0], [1], [0, 0, 1, 1], [], []>} : vector<2x128xf32>, vector<128x128xf32>, vector<2x128xf32> -> vector<2x128xf32>
    %c0_12 = arith.constant 0 : index
    %c0_13 = arith.constant 0 : index
    %12 = vector.load %arg6[%c0_12, %c0_13] : memref<1x128xf32, #tpu.memory_space<vmem>>, vector<1x128xf32>
    %13 = vector.broadcast %12 : vector<1x128xf32> to vector<2x128xf32>
    %14 = arith.addf %11, %13 : vector<2x128xf32>
    %15 = arith.truncf %9 : vector<2x128xf32> to vector<2x128xbf16>
    %c0_14 = arith.constant 0 : index
    %c0_15 = arith.constant 0 : index
    %16 = vector.load %arg9[%c0_14, %c0_15] : memref<2x128xbf16, #tpu.memory_space<vmem>>, vector<2x128xbf16>
    tpu.vector_store %arg9[%c0_14, %c0_15], %15 {strides = array<i32>} : memref<2x128xbf16, #tpu.memory_space<vmem>>, vector<2x128xbf16>,
    %c0_16 = arith.constant 0 : index
    %c0_17 = arith.constant 0 : index
    %17 = vector.load %arg10[%c0_16, %c0_17] : memref<2x128xf32, #tpu.memory_space<vmem>>, vector<2x128xf32>
    tpu.vector_store %arg10[%c0_16, %c0_17], %14 {strides = array<i32>} : memref<2x128xf32, #tpu.memory_space<vmem>>, vector<2x128xf32>,
    %18 = tpu.concatenate %9, %14 in 1 : vector<2x128xf32>, vector<2x128xf32> -> vector<2x256xf32>
    %c0_18 = arith.constant 0 : index
    %c0_19 = arith.constant 0 : index
    %19 = vector.load %arg7[%c0_18, %c0_19] : memref<256x128xf32, #tpu.memory_space<vmem>>, vector<256x128xf32>
    %cst_20 = arith.constant dense<0.000000e+00> : vector<2x128xf32>
    %20 = tpu.matmul %18, %19, %cst_20 {dimension_numbers = #tpu.dot_dimension_numbers<[1], [0], [0], [1], [0, 0, 1, 1], [], []>} : vector<2x256xf32>, vector<256x128xf32>, vector<2x128xf32> -> vector<2x128xf32>
    %c0_21 = arith.constant 0 : index
    %c0_22 = arith.constant 0 : index
    %21 = vector.load %arg8[%c0_21, %c0_22] : memref<1x128xf32, #tpu.memory_space<vmem>>, vector<1x128xf32>
    %22 = vector.broadcast %21 : vector<1x128xf32> to vector<2x128xf32>
    %23 = arith.addf %20, %22 : vector<2x128xf32>
    %c0_23 = arith.constant 0 : index
    %c0_24 = arith.constant 0 : index
    %24 = vector.load %arg11[%c0_23, %c0_24] : memref<2x128xf32, #tpu.memory_space<vmem>>, vector<2x128xf32>
    tpu.vector_store %arg11[%c0_23, %c0_24], %23 {strides = array<i32>} : memref<2x128xf32, #tpu.memory_space<vmem>>, vector<2x128xf32>,
    return
  }
  func.func @transform_0(%arg0: i32) -> (i32, i32) {
    %c0_i32 = arith.constant 0 : i32
    %c0_i32_0 = arith.constant 0 : i32
    %c0_i32_1 = arith.constant 0 : i32
    return %c0_i32, %c0_i32_0 : i32, i32
  }
  func.func @transform_1(%arg0: i32) -> (i32, i32) {
    %c0_i32 = arith.constant 0 : i32
    %c0_i32_0 = arith.constant 0 : i32
    %c0_i32_1 = arith.constant 0 : i32
    return %c0_i32, %c0_i32_0 : i32, i32
  }
  func.func @transform_2(%arg0: i32) -> (i32, i32) {
    %c0_i32 = arith.constant 0 : i32
    %c0_i32_0 = arith.constant 0 : i32
    %c0_i32_1 = arith.constant 0 : i32
    return %c0_i32, %c0_i32_0 : i32, i32
  }
  func.func @transform_3(%arg0: i32) -> (i32, i32) {
    %c0_i32 = arith.constant 0 : i32
    %c0_i32_0 = arith.constant 0 : i32
    %c0_i32_1 = arith.constant 0 : i32
    return %c0_i32, %c0_i32_0 : i32, i32
  }
  func.func @transform_4(%arg0: i32) -> (i32, i32) {
    %c0_i32 = arith.constant 0 : i32
    %c0_i32_0 = arith.constant 0 : i32
    %c0_i32_1 = arith.constant 0 : i32
    return %c0_i32, %c0_i32_0 : i32, i32
  }
  func.func @transform_5(%arg0: i32) -> (i32, i32) {
    %c0_i32 = arith.constant 0 : i32
    %c0_i32_0 = arith.constant 0 : i32
    %c0_i32_1 = arith.constant 0 : i32
    return %c0_i32, %c0_i32_0 : i32, i32
  }
  func.func @transform_6(%arg0: i32) -> (i32, i32) {
    %c0_i32 = arith.constant 0 : i32
    %c0_i32_0 = arith.constant 0 : i32
    %c0_i32_1 = arith.constant 0 : i32
    return %c0_i32, %c0_i32_0 : i32, i32
  }
  func.func @transform_7(%arg0: i32) -> (i32, i32) {
    %c0_i32 = arith.constant 0 : i32
    %c0_i32_0 = arith.constant 0 : i32
    %c0_i32_1 = arith.constant 0 : i32
    return %c0_i32, %c0_i32_0 : i32, i32
  }
  func.func @transform_8(%arg0: i32) -> (i32, i32) {
    %c0_i32 = arith.constant 0 : i32
    %c0_i32_0 = arith.constant 0 : i32
    %c0_i32_1 = arith.constant 0 : i32
    return %c0_i32, %c0_i32_0 : i32, i32
  }
  func.func @transform_9(%arg0: i32) -> (i32, i32) {
    %c0_i32 = arith.constant 0 : i32
    %c0_i32_0 = arith.constant 0 : i32
    %c0_i32_1 = arith.constant 0 : i32
    return %c0_i32, %c0_i32_0 : i32, i32
  }
  func.func @transform_10(%arg0: i32) -> (i32, i32) {
    %c0_i32 = arith.constant 0 : i32
    %c0_i32_0 = arith.constant 0 : i32
    %c0_i32_1 = arith.constant 0 : i32
    return %c0_i32, %c0_i32_0 : i32, i32
  }
}

module attributes {stable_mosaic.version = 11 : i64} {
  func.func @mesh_kernel(%arg0: i32, %arg1: memref<2x176xbf16, #tpu.memory_space<vmem>>, %arg2: memref<176x2432xbf16, #tpu.memory_space<vmem>>, %arg3: memref<2x2432xf32, #tpu.memory_space<vmem>>) attributes {dimension_semantics = [#tpu.dimension_semantics<parallel>], iteration_bounds = array<i64: 1>, scalar_prefetch = 0 : i64, scratch_operands = 0 : i64, tpu.core_type = #tpu.core_type<tc>, window_params = [{pipeline_mode = #tpu.pipeline_mode<synchronous>, transform_indices = @transform_0, window_bounds = array<i64: 2, 176>}, {transform_indices = @transform_1, window_bounds = array<i64: 176, 2432>}, {transform_indices = @transform_2, window_bounds = array<i64: 2, 2432>}]} {
    %c0 = arith.constant 0 : index
    %c0_0 = arith.constant 0 : index
    %0 = vector.load %arg1[%c0, %c0_0] : memref<2x176xbf16, #tpu.memory_space<vmem>>, vector<2x176xbf16>
    %c0_1 = arith.constant 0 : index
    %c0_2 = arith.constant 0 : index
    %1 = vector.load %arg2[%c0_1, %c0_2] : memref<176x2432xbf16, #tpu.memory_space<vmem>>, vector<176x2432xbf16>
    %cst = arith.constant dense<0.000000e+00> : vector<2x2432xf32>
    %2 = tpu.matmul %0, %1, %cst {dimension_numbers = #tpu.dot_dimension_numbers<[1], [0], [0], [1], [0, 0, 1, 1], [], []>} : vector<2x176xbf16>, vector<176x2432xbf16>, vector<2x2432xf32> -> vector<2x2432xf32>
    %c0_3 = arith.constant 0 : index
    %c0_4 = arith.constant 0 : index
    %3 = vector.load %arg3[%c0_3, %c0_4] : memref<2x2432xf32, #tpu.memory_space<vmem>>, vector<2x2432xf32>
    tpu.vector_store %arg3[%c0_3, %c0_4], %2 {strides = array<i32>} : memref<2x2432xf32, #tpu.memory_space<vmem>>, vector<2x2432xf32>,
    return
  }
  func.func @transform_0(%arg0: i32) -> (i32, i32) {
    %c0_i32 = arith.constant 0 : i32
    %c0_i32_0 = arith.constant 0 : i32
    %c0_i32_1 = arith.constant 0 : i32
    return %c0_i32, %c0_i32_0 : i32, i32
  }
  func.func @transform_1(%arg0: i32) -> (i32, i32) {
    %c0_i32 = arith.constant 0 : i32
    %c0_i32_0 = arith.constant 0 : i32
    return %c0_i32, %arg0 : i32, i32
  }
  func.func @transform_2(%arg0: i32) -> (i32, i32) {
    %c0_i32 = arith.constant 0 : i32
    %c0_i32_0 = arith.constant 0 : i32
    return %c0_i32, %arg0 : i32, i32
  }
}

</mosaic_0001>

<bundles_post_ra>
// kernel: handnet_forward.2
= control target key start
LH: loop header
LB: loop body
LE: loop exit
PB: predicated region body
PF: predicated region fallthrough
CT: control target
= control target key end

     0   :  { %vm57_vm0 = vcmask 523264   ;;  %vm171_vm1 = vcmask 1041408   ;;  %vm167_vm2 = vcmask 801792   ;;  %s684_s2 = inlined_call_operand.vmem [shape: f32[64,128], index: 2, kind: input, shape index: {}]   ;;  %s685_s3 = inlined_call_operand.vmem [shape: f32[1,128], index: 3, kind: input, shape index: {}]   ;;  %s686_s0 = inlined_call_operand.vmem [shape: f32[98,64], index: 0, kind: input, shape index: {}]   ;;  %s687_s4 = inlined_call_operand.vmem [shape: f32[128,128], index: 4, kind: input, shape index: {}]   ;;  %s688_s6 = inlined_call_operand.vmem [shape: f32[256,128], index: 6, kind: input, shape index: {}]   ;;  %s689_s1 = inlined_call_operand.vmem [shape: f32[2,98], index: 1, kind: input, shape index: {}]   ;;  %s690_s5 = inlined_call_operand.vmem [shape: f32[1,128], index: 5, kind: input, shape index: {}]   ;;  %s691_s8 = inlined_call_operand.vmem [shape: bf16[2,128], index: 8, kind: output, shape index: {0}]   ;;  %s692_s7 = inlined_call_operand.vmem [shape: f32[1,128], index: 7, kind: input, shape index: {}]   ;;  %s693_s9 = inlined_call_operand.vmem [shape: f32[2,128], index: 9, kind: output, shape index: {1}]   ;;  %s694_s10 = inlined_call_operand.vmem [shape: f32[2,128], index: 10, kind: output, shape index: {2}]  }
   0x1   :  { %v52_v0 = vld [vmem:[%s684_s2 + $0x38] sm:$0xff]  ;;  %v51_v1 = vld [vmem:[%s684_s2 + $0x30] sm:$0xff]  ;;  %v50_v2 = vld [vmem:[%s684_s2 + $0x28] sm:$0xff] }
   0x2   :  { %105 = vmatpush.msra.mxu0 %v52_v0  ;;  %342 = vmatpush.msra.mxu2 %v52_v0  ;;  %v49_v3 = vld [vmem:[%s684_s2 + $0x20] sm:$0xff]  ;;  %v48_v4 = vld [vmem:[%s684_s2 + $0x18] sm:$0xff]  ;;  %v47_v5 = vld [vmem:[%s684_s2 + $0x10] sm:$0xff] }
   0x3   :  { %343 = vmatpush.msra.mxu3 %v52_v0  ;;  %v46_v6 = vld [vmem:[%s684_s2 + $0x8] sm:$0xff]  ;;  %v45_v7 = vld [vmem:[%s684_s2] sm:$0xff]  ;;  %v38_v9 = vld [vmem:[%s686_s0 + $0x30] sm:$0xff] }
   0x4   :  { %106 = vmatpush.msra.mxu0 %v51_v1  ;;  %344 = vmatpush.msra.mxu2 %v51_v1  ;;  %v32_v8 = vld [vmem:[%s686_s0] sm:$0xff]  ;;  %v42_v10 = vld [vmem:[%s686_s0 + $0x50] sm:$0xff]  ;;  %v33_v11 = vld [vmem:[%s686_s0 + $0x8] sm:$0xff] }
   0x5   :  { %345 = vmatpush.msra.mxu3 %v51_v1  ;;  %v39_v12 = vld [vmem:[%s686_s0 + $0x38] sm:$0xff]  ;;  %v34_v14 = vld [vmem:[%s686_s0 + $0x10] sm:$0xff]  ;;  %v40_v15 = vld [vmem:[%s686_s0 + $0x40] sm:$0xff] }
   0x6   :  { %107 = vmatpush.msra.mxu0 %v50_v2  ;;  %346 = vmatpush.msra.mxu2 %v50_v2  ;;  %v43_v13 = vld [vmem:[%s686_s0 + $0x58] sm:$0xff]  ;;  %v44_v16 = vld [vmem:[%s686_s0 + $0x60] sm:$0x3]  ;;  %v41_v18 = vld [vmem:[%s686_s0 + $0x48] sm:$0xff] }
   0x7   :  { %347 = vmatpush.msra.mxu3 %v50_v2  ;;  %v35_v17 = vld [vmem:[%s686_s0 + $0x18] sm:$0xff]  ;;  %v36_v19 = vld [vmem:[%s686_s0 + $0x20] sm:$0xff]  ;;  %v37_v20 = vld [vmem:[%s686_s0 + $0x28] sm:$0xff] }
   0x8   :  { %108 = vmatpush.msra.mxu0 %v49_v3  ;;  %348 = vmatpush.msra.mxu2 %v49_v3  ;;  %v501_v28 = vld [vmem:[%s685_s3] ss:$0 sm:$0xff]  ;;  %v210_v34 = vld [vmem:[%s687_s4 + $0x78] sm:$0xff]  ;;  %v209_v36 = vld [vmem:[%s687_s4 + $0x70] sm:$0xff] }
   0x9   :  { %349 = vmatpush.msra.mxu3 %v49_v3  ;;  %v253_v35 = vld [vmem:[%s688_s6 + $0x78] sm:$0xff]  ;;  %v252_v37 = vld [vmem:[%s688_s6 + $0x70] sm:$0xff]  ;;  %v208_v40 = vld [vmem:[%s687_s4 + $0x68] sm:$0xff] }
   0xa   :  { %109 = vmatpush.msra.mxu0 %v48_v4  ;;  %350 = vmatpush.msra.mxu2 %v48_v4  ;;  %v251_v41 = vld [vmem:[%s688_s6 + $0x68] sm:$0xff]  ;;  %v207_v43 = vld [vmem:[%s687_s4 + $0x60] sm:$0xff]  ;;  %v206_v46 = vld [vmem:[%s687_s4 + $0x58] sm:$0xff] }
   0xb   :  { %351 = vmatpush.msra.mxu3 %v48_v4  ;;  %v250_v44 = vld [vmem:[%s688_s6 + $0x60] sm:$0xff]  ;;  %v249_v47 = vld [vmem:[%s688_s6 + $0x58] sm:$0xff]  ;;  %v205_v52 = vld [vmem:[%s687_s4 + $0x50] sm:$0xff] }
   0xc   :  { %110 = vmatpush.msra.mxu0 %v47_v5  ;;  %352 = vmatpush.msra.mxu2 %v47_v5  ;;  %v248_v53 = vld [vmem:[%s688_s6 + $0x50] sm:$0xff]  ;;  %v204_v56 = vld [vmem:[%s687_s4 + $0x48] sm:$0xff]  ;;  %v203_v60 = vld [vmem:[%s687_s4 + $0x40] sm:$0xff] }
   0xd   :  { %353 = vmatpush.msra.mxu3 %v47_v5  ;;  %v247_v57 = vld [vmem:[%s688_s6 + $0x48] sm:$0xff]  ;;  %v246_v61 = vld [vmem:[%s688_s6 + $0x40] sm:$0xff]  ;;  %v202_v63 = vld [vmem:[%s687_s4 + $0x38] sm:$0xff] }
   0xe   :  { %111 = vmatpush.msra.mxu0 %v46_v6  ;;  %354 = vmatpush.msra.mxu2 %v46_v6  ;;  %v245_v0 = vld [vmem:[%s688_s6 + $0x38] sm:$0xff]  ;;  %v201_v3 = vld [vmem:[%s687_s4 + $0x30] sm:$0xff] }
   0xf   :  { %355 = vmatpush.msra.mxu3 %v46_v6  ;;  %v244_v4 = vld [vmem:[%s688_s6 + $0x30] sm:$0xff] }
  0x10   :  { %112 = vmatpush.msra.mxu0 %v45_v7  ;;  %356 = vmatpush.msra.mxu2 %v45_v7 }
  0x11   :  { %357 = vmatpush.msra.mxu3 %v45_v7  ;;  %327 = vmatmul.msk.f32.vlgmr.msra.gmra.mxu0 %vm57_vm0, %v32_v8  ;;  %v200_v7 = vld [vmem:[%s687_s4 + $0x28] sm:$0xff] }
  0x12   :  { %333 = vmatmul.msk.f32.vlgmr.msra.gmra.mxu2 %vm57_vm0, %v38_v9  ;;  %337 = vmatmul.msk.f32.vlgmr.msra.gmra.mxu3 %vm57_vm0, %v42_v10  ;;  %v243_v10 = vld [vmem:[%s688_s6 + $0x28] sm:$0xff] }
  0x13   :  { %215 = vmatpush.msrb.mxu2 %v210_v34  ;;  %274 = vmatpush.msrb.mxu3 %v253_v35  ;;  %v265_v34 = vld [vmem:[%s688_s6 + $0xd8] sm:$0xff]  ;;  %v264_v35 = vld [vmem:[%s688_s6 + $0xd0] sm:$0xff] }
  0x15   :  { %216 = vmatpush.msrb.mxu2 %v209_v36  ;;  %275 = vmatpush.msrb.mxu3 %v252_v37  ;;  %v263_v36 = vld [vmem:[%s688_s6 + $0xc8] sm:$0xff]  ;;  %v262_v37 = vld [vmem:[%s688_s6 + $0xc0] sm:$0xff] }
  0x17   :  { %217 = vmatpush.msrb.mxu2 %v208_v40  ;;  %276 = vmatpush.msrb.mxu3 %v251_v41  ;;  %v259_v40 = vld [vmem:[%s688_s6 + $0xa8] sm:$0xff]  ;;  %v258_v41 = vld [vmem:[%s688_s6 + $0xa0] sm:$0xff] }
  0x19   :  { %328 = vmatmul.msk.f32.gmra.mxu0 %vm57_vm0, %v33_v11  ;;  %218 = vmatpush.msrb.mxu2 %v207_v43  ;;  %v199_v11 = vld [vmem:[%s687_s4 + $0x20] sm:$0xff]  ;;  %v256_v43 = vld [vmem:[%s688_s6 + $0x90] sm:$0xff] }
  0x1a   :  { %334 = vmatmul.msk.f32.gmra.mxu2 %vm57_vm0, %v39_v12  ;;  %338 = vmatmul.msk.f32.gmra.mxu3 %vm57_vm0, %v43_v13 }
  0x1b   :  { %277 = vmatpush.msrb.mxu3 %v250_v44  ;;  %219 = vmatpush.msrb.mxu2 %v206_v46  ;;  %v255_v46 = vld [vmem:[%s688_s6 + $0x88] sm:$0xff] }
  0x1d   :  { %278 = vmatpush.msrb.mxu3 %v249_v47  ;;  %220 = vmatpush.msrb.mxu2 %v205_v52  ;;  %v254_v47 = vld [vmem:[%s688_s6 + $0x80] sm:$0xff] }
  0x1f   :  { %279 = vmatpush.msrb.mxu3 %v248_v53  ;;  %221 = vmatpush.msrb.mxu2 %v204_v56 }
  0x21   :  { %329 = vmatmul.msk.f32.gmra.mxu0 %vm57_vm0, %v34_v14  ;;  %280 = vmatpush.msrb.mxu3 %v247_v57  ;;  %v242_v14 = vld [vmem:[%s688_s6 + $0x20] sm:$0xff] }
  0x22   :  { %335 = vmatmul.msk.f32.gmra.mxu2 %vm57_vm0, %v40_v15  ;;  %339 = vmatmul.msk.f32.gmra.mxu3 %vm57_vm0, %v44_v16  ;;  %v198_v15 = vld [vmem:[%s687_s4 + $0x18] sm:$0xff] }
  0x23   :  { %222 = vmatpush.msrb.mxu2 %v203_v60  ;;  %281 = vmatpush.msrb.mxu3 %v246_v61 }
  0x25   :  { %223 = vmatpush.msrb.mxu2 %v202_v63  ;;  %282 = vmatpush.msrb.mxu3 %v245_v0 }
  0x27   :  { %224 = vmatpush.msrb.mxu2 %v201_v3  ;;  %283 = vmatpush.msrb.mxu3 %v244_v4 }
  0x29   :  { %330 = vmatmul.msk.f32.gmra.mxu0 %vm57_vm0, %v35_v17  ;;  %225 = vmatpush.msrb.mxu2 %v200_v7 }
  0x2a   :  { %336 = vmatmul.msk.f32.gmra.mxu2 %vm57_vm0, %v41_v18  ;;  %284 = vmatpush.msrb.mxu3 %v243_v10  ;;  %v241_v18 = vld [vmem:[%s688_s6 + $0x18] sm:$0xff] }
  0x2b   :  { %226 = vmatpush.msrb.mxu2 %v199_v11 }
  0x2c   :  { %285 = vmatpush.msrb.mxu3 %v242_v14 }
  0x2d   :  { %227 = vmatpush.msrb.mxu2 %v198_v15 }
  0x2e   :  { %286 = vmatpush.msrb.mxu3 %v241_v18 }
  0x31   :  { %331 = vmatmul.msk.f32.gmra.mxu0 %vm57_vm0, %v36_v19  ;;  %v197_v19 = vld [vmem:[%s687_s4 + $0x10] sm:$0xff] }
  0x32   :  { %228 = vmatpush.msrb.mxu2 %v197_v19 }
  0x39   :  { %332 = vmatmul.msk.f32.gmra.mxu0 %vm57_vm0, %v37_v20 }
  0x8e   :  { %v492_v21 = vpop.f32.mrf.mxu0 }
  0x8f   :  { %v115_v20 = vadd.f32 %v501_v28, %v492_v21  ;;  %v195_v21 = vld [vmem:[%s687_s4] sm:$0xff] }
  0x95   :  { %v132_v22 = vpop.f32.mrf.mxu2  ;;  %v144_v23 = vpop.f32.mrf.mxu3 }
  0x96   :  { %v494_v24 = vpop.f32.mrf.mxu0  ;;  %v145_v38 = vadd.f32 %v501_v28, %v144_v23  ;;  %v133_v58 = vadd.f32 %v501_v28, %v132_v22  ;;  %v240_v23 = vld [vmem:[%s688_s6 + $0x10] sm:$0xff] }
  0x97   :  { %v118_v16 = vadd.f32 %v501_v28, %v494_v24  ;;  %v196_v24 = vld [vmem:[%s687_s4 + $0x8] sm:$0xff]  ;;  %287 = vmatpush.msrb.mxu3 %v240_v23 }
  0x98   :  { %v163_v45 = vmax.f32 %v145_v38, 0.0  ;;  %v159_v1 = vmax.f32 %v133_v58, 0.0  ;;  %229 = vmatpush.msrb.mxu2 %v196_v24  ;;  %v261_v38 = vld [vmem:[%s688_s6 + $0xb8] sm:$0xff] }
  0x9a   :  { %230 = vmatpush.msrb.mxu2 %v195_v21 }
  0x9d   :  { %v135_v25 = vpop.f32.mrf.mxu2  ;;  %v147_v26 = vpop.f32.mrf.mxu3 }
  0x9e   :  { %v496_v27 = vpop.f32.mrf.mxu0  ;;  %v148_v31 = vadd.f32 %v501_v28, %v147_v26  ;;  %v136_v54 = vadd.f32 %v501_v28, %v135_v25  ;;  %v154_v25 = vmax.f32 %v118_v16, 0.0  ;;  %v239_v26 = vld [vmem:[%s688_s6 + $0x8] sm:$0xff] }
  0x9f   :  { %v121_v12 = vadd.f32 %v501_v28, %v496_v27  ;;  %v153_v27 = vmax.f32 %v115_v20, 0.0  ;;  %288 = vmatpush.msrb.mxu3 %v239_v26 }
  0xa0   :  { %v164_v42 = vmax.f32 %v148_v31, 0.0  ;;  %v160_v62 = vmax.f32 %v136_v54, 0.0  ;;  %v268_v31 = vld [vmem:[%s688_s6 + $0xf0] sm:$0xff] }
  0xa1   :  { %v155_v22 = vmax.f32 %v121_v12, 0.0 }
  0xa5   :  { %v138_v29 = vpop.f32.mrf.mxu2  ;;  %v150_v30 = vpop.f32.mrf.mxu3 }
  0xa6   :  { %v151_v32 = vadd.f32 %v501_v28, %v150_v30  ;;  %v505_v33 = vpop.f32.mrf.mxu0  ;;  %v139_v49 = vadd.f32 %v501_v28, %v138_v29  ;;  %v238_v29 = vld [vmem:[%s688_s6] sm:$0xff]  ;;  %v269_v30 = vld [vmem:[%s688_s6 + $0xf8] sm:$0xff] }
  0xa7   :  { %v124_v8 = vadd.f32 %v501_v28, %v505_v33  ;;  %289 = vmatpush.msrb.mxu3 %v238_v29  ;;  %v266_v33 = vld [vmem:[%s688_s6 + $0xe0] sm:$0xff] }
  0xa8   :  { %v165_v39 = vmax.f32 %v151_v32, 0.0  ;;  %v161_v59 = vmax.f32 %v139_v49, 0.0  ;;  %v267_v32 = vld [vmem:[%s688_s6 + $0xe8] sm:$0xff] }
  0xa9   :  { %v156_v17 = vmax.f32 %v124_v8, 0.0 }
  0xaa   :  { %340 = vmatpush.msk.msra.mxu1 %vm171_vm1, %v165_v39  ;;  %v260_v39 = vld [vmem:[%s688_s6 + $0xb0] sm:$0xff] }
  0xac   :  { %179 = vmatpush.msra.mxu1 %v164_v42  ;;  %v257_v42 = vld [vmem:[%s688_s6 + $0x98] sm:$0xff] }
  0xad   :  { %v141_v48 = vpop.f32.mrf.mxu2 }
  0xae   :  { %v142_v50 = vadd.f32 %v501_v28, %v141_v48  ;;  %180 = vmatpush.msra.mxu1 %v163_v45  ;;  %v126_v51 = vpop.f32.mrf.mxu0  ;;  %v359_v48 = vld [vmem:[%s690_s5] ss:$0 sm:$0xff] }
  0xaf   :  { %v127_v5 = vadd.f32 %v501_v28, %v126_v51  ;;  %v360_v51 = vld [vmem:[%s692_s7] ss:$0 sm:$0xff] }
  0xb0   :  { %v162_v55 = vmax.f32 %v142_v50, 0.0 }
  0xb1   :  { %v157_v13 = vmax.f32 %v127_v5, 0.0 }
  0xb2   :  { %181 = vmatpush.msra.mxu1 %v162_v55 }
  0xb4   :  { %182 = vmatpush.msra.mxu1 %v161_v59 }
  0xb6   :  { %183 = vmatpush.msra.mxu1 %v160_v62  ;;  %v129_v2 = vpop.f32.mrf.mxu0 }
  0xb7   :  { %v130_v6 = vadd.f32 %v501_v28, %v129_v2  ;;  %v166_v28 = vld [vmem:[%s689_s1] sm:$0x3] }
  0xb8   :  { %184 = vmatpush.msra.mxu1 %v159_v1 }
  0xb9   :  { %v158_v9 = vmax.f32 %v130_v6, 0.0 }
  0xbb   :  { %185 = vmatpush.msra.mxu1 %v158_v9 }
  0xbd   :  { %186 = vmatpush.msra.mxu1 %v157_v13 }
  0xbf   :  { %187 = vmatpush.msra.mxu1 %v156_v17 }
  0xc1   :  { %188 = vmatpush.msra.mxu1 %v155_v22 }
  0xc3   :  { %189 = vmatpush.msra.mxu1 %v154_v25 }
  0xc5   :  { %190 = vmatpush.msra.mxu1 %v153_v27 }
  0xc6   :  { %341 = vmatmul.msk.f32.vlgmr.msra.gmra.mxu1 %vm167_vm2, %v166_v28 }
  0xc7   :  { %294 = vmatpush.msrb.mxu1 %v269_v30 }
  0xc9   :  { %295 = vmatpush.msrb.mxu1 %v268_v31 }
  0xcb   :  { %296 = vmatpush.msrb.mxu1 %v267_v32 }
  0xcd   :  { %297 = vmatpush.msrb.mxu1 %v266_v33 }
  0xcf   :  { %298 = vmatpush.msrb.mxu1 %v265_v34 }
  0xd1   :  { %299 = vmatpush.msrb.mxu1 %v264_v35 }
  0xd3   :  { %300 = vmatpush.msrb.mxu1 %v263_v36 }
  0xd5   :  { %301 = vmatpush.msrb.mxu1 %v262_v37 }
  0xd7   :  { %302 = vmatpush.msrb.mxu1 %v261_v38 }
  0xd9   :  { %303 = vmatpush.msrb.mxu1 %v260_v39 }
  0xdb   :  { %304 = vmatpush.msrb.mxu1 %v259_v40 }
  0xdd   :  { %305 = vmatpush.msrb.mxu1 %v258_v41 }
  0xdf   :  { %306 = vmatpush.msrb.mxu1 %v257_v42 }
  0xe1   :  { %307 = vmatpush.msrb.mxu1 %v256_v43 }
  0xe3   :  { %308 = vmatpush.msrb.mxu1 %v255_v46 }
  0xe5   :  { %309 = vmatpush.msrb.mxu1 %v254_v47 }
 0x143   :  { %v192_v44 = vpop.f32.mrf.mxu1 }
 0x144   :  { %v235_v45 = vpack.c.bf16 %v192_v44, %v192_v44  ;;  %231 = vmatmul.f32.vlgmr.msrb.gmra.mxu2 %v192_v44  ;;  %290 = vmatmul.f32.vlgmr.msrb.gmra.mxu3 %v192_v44 }
 0x146   :  { %236 = vst [vmem:[%s691_s8] sm:$0x1] %v235_v45 }
 0x1c7   :  { %v232_v49 = vpop.f32.mrf.mxu2  ;;  %v291_v52 = vpop.f32.mrf.mxu3 }
 0x1c8   :  { %v233_v50 = vadd.f32 %v359_v48, %v232_v49  ;;  %v292_v53 = vadd.f32 %v360_v51, %v291_v52 }
 0x1ca   :  { %237 = vst [vmem:[%s693_s9] sm:$0x3] %v233_v50  ;;  %310 = vmatmul.f32.vlgmr.msrb.gmra.mxu1 %v233_v50 }
 0x247   :  { %v311_v54 = vpop.f32.mrf.mxu1 }
 0x248   :  { %v312_v55 = vadd.f32 %v311_v54, %v292_v53 }
 0x24a   :  { %314 = vst [vmem:[%s694_s10] sm:$0x3] %v312_v55 }

// kernel: handnet_forward.3
= control target key start
LH: loop header
LB: loop body
LE: loop exit
PB: predicated region body
PF: predicated region fallthrough
CT: control target
= control target key end

     0   :  { %vm1294_vm0 = vcmask 392192   ;;  %vm1824_vm1 = vcmask 1041408   ;;  %vm1826_vm2 = vcmask 1045508   ;;  %vm1828_vm3 = vcmask 1043456   ;;  %s4302_s1 = inlined_call_operand.vmem [shape: bf16[176,2432], index: 1, kind: input, shape index: {}]   ;;  %s4303_s0 = inlined_call_operand.vmem [shape: bf16[2,176], index: 0, kind: input, shape index: {}]   ;;  %s4304_s2 = inlined_call_operand.vmem [shape: f32[2,2432], index: 2, kind: output, shape index: {}]  }
   0x1   :  { %v2389_v0 = vld [vmem:[%s4302_s1 + $0x428] sm:$0xf]  ;;  %v2852_v1 = vld [vmem:[%s4302_s1 + $0x470] sm:$0xf0]  ;;  %v2617_v2 = vld [vmem:[%s4302_s1 + $0x5f0] sm:$0xf] }
   0x2   :  { %v2390_v3 = vor.u32 %v2852_v1, %v2389_v0  ;;  %v2909_v4 = vld [vmem:[%s4302_s1 + $0x638] sm:$0xf0]  ;;  %v2843_v5 = vld [vmem:[%s4302_s1 + $0x42c] sm:$0xf]  ;;  %v2391_v6 = vld [vmem:[%s4302_s1 + $0x474] sm:$0xf0] }
   0x3   :  { %v2618_v7 = vor.u32 %v2909_v4, %v2617_v2  ;;  %v2394_v8 = vor.u32 %v2843_v5, %v2391_v6  ;;  %v2900_v9 = vld [vmem:[%s4302_s1 + $0x5f4] sm:$0xf]  ;;  %v2619_v10 = vld [vmem:[%s4302_s1 + $0x63c] sm:$0xf0]  ;;  %v2313_v11 = vld [vmem:[%s4302_s1 + $0x390] sm:$0xf] }
   0x4   :  { %1297 = vmatpush.bf16.msra.mxu0 %v2390_v3  ;;  %v2622_v12 = vor.u32 %v2900_v9, %v2619_v10  ;;  %v2833_v13 = vld [vmem:[%s4302_s1 + $0x3d8] sm:$0xf0]  ;;  %v2541_v14 = vld [vmem:[%s4302_s1 + $0x558] sm:$0xf]  ;;  %v2890_v15 = vld [vmem:[%s4302_s1 + $0x5a0] sm:$0xf0] }
   0x5   :  { %1315 = vmatpush.bf16.msra.mxu1 %v2618_v7  ;;  %1323 = vmatpush.bf16.msra.mxu2 %v2394_v8  ;;  %v2314_v16 = vor.u32 %v2833_v13, %v2313_v11  ;;  %v2542_v17 = vor.u32 %v2890_v15, %v2541_v14  ;;  %v2824_v18 = vld [vmem:[%s4302_s1 + $0x394] sm:$0xf]  ;;  %v2315_v19 = vld [vmem:[%s4302_s1 + $0x3dc] sm:$0xf0]  ;;  %v2881_v20 = vld [vmem:[%s4302_s1 + $0x55c] sm:$0xf] }
   0x6   :  { %1341 = vmatpush.bf16.msra.mxu3 %v2622_v12  ;;  %v2318_v21 = vor.u32 %v2824_v18, %v2315_v19  ;;  %v2543_v22 = vld [vmem:[%s4302_s1 + $0x5a4] sm:$0xf0]  ;;  %v2237_v23 = vld [vmem:[%s4302_s1 + $0x2f8] sm:$0xf]  ;;  %v2814_v24 = vld [vmem:[%s4302_s1 + $0x340] sm:$0xf0] }
   0x7   :  { %v2546_v25 = vor.u32 %v2881_v20, %v2543_v22  ;;  %v2465_v26 = vld [vmem:[%s4302_s1 + $0x4c0] sm:$0xf]  ;;  %v2871_v27 = vld [vmem:[%s4302_s1 + $0x508] sm:$0xf0]  ;;  %v2805_v28 = vld [vmem:[%s4302_s1 + $0x2fc] sm:$0xf]  ;;  %v2238_v29 = vor.u32 %v2814_v24, %v2237_v23 }
   0x8   :  { %1298 = vmatpush.bf16.msra.mxu0 %v2314_v16  ;;  %v2239_v30 = vld [vmem:[%s4302_s1 + $0x344] sm:$0xf0]  ;;  %v2862_v31 = vld [vmem:[%s4302_s1 + $0x4c4] sm:$0xf]  ;;  %v2467_v32 = vld [vmem:[%s4302_s1 + $0x50c] sm:$0xf0]  ;;  %v2466_v33 = vor.u32 %v2871_v27, %v2465_v26 }
   0x9   :  { %1316 = vmatpush.bf16.msra.mxu1 %v2542_v17  ;;  %1324 = vmatpush.bf16.msra.mxu2 %v2318_v21  ;;  %v2242_v34 = vor.u32 %v2805_v28, %v2239_v30  ;;  %v2397_v35 = vld [vmem:[%s4302_s1 + $0x430] sm:$0xf]  ;;  %v2853_v36 = vld [vmem:[%s4302_s1 + $0x478] sm:$0xf0]  ;;  %v2625_v37 = vld [vmem:[%s4302_s1 + $0x5f8] sm:$0xf]  ;;  %v2470_v38 = vor.u32 %v2862_v31, %v2467_v32 }
   0xa   :  { %1342 = vmatpush.bf16.msra.mxu3 %v2546_v25  ;;  %v2398_v39 = vor.u32 %v2853_v36, %v2397_v35  ;;  %v2910_v40 = vld [vmem:[%s4302_s1 + $0x640] sm:$0xf0]  ;;  %v12_v41 = vld [vmem:[%s4303_s0] sm:$0x3]  ;;  %v2795_v44 = vld [vmem:[%s4302_s1 + $0x2a8] sm:$0xf0] }
   0xb   :  { %v2161_v42 = vld [vmem:[%s4302_s1 + $0x260] sm:$0xf]  ;;  %v2626_v43 = vor.u32 %v2910_v40, %v2625_v37  ;;  %234 = vst [vmem:[#allocation1] ss:$9 sm:$0xff] %v12_v41  ;;  %v2786_v45 = vld [vmem:[%s4302_s1 + $0x264] sm:$0xf] }
   0xc   :  { %1299 = vmatpush.bf16.msra.mxu0 %v2238_v29  ;;  %v2162_v46 = vor.u32 %v2795_v44, %v2161_v42  ;;  %v2163_v47 = vld [vmem:[%s4302_s1 + $0x2ac] sm:$0xf0]  ;;  %v2321_v48 = vld [vmem:[%s4302_s1 + $0x398] sm:$0xf]  ;;  %v2834_v49 = vld [vmem:[%s4302_s1 + $0x3e0] sm:$0xf0] }
   0xd   :  { %1317 = vmatpush.bf16.msra.mxu1 %v2466_v33  ;;  %1325 = vmatpush.bf16.msra.mxu2 %v2242_v34  ;;  %v2166_v50 = vor.u32 %v2786_v45, %v2163_v47  ;;  %v2549_v51 = vld [vmem:[%s4302_s1 + $0x560] sm:$0xf]  ;;  %v2891_v52 = vld [vmem:[%s4302_s1 + $0x5a8] sm:$0xf0]  ;;  %v2085_v53 = vld [vmem:[%s4302_s1 + $0x1c8] sm:$0xf]  ;;  %v2322_v54 = vor.u32 %v2834_v49, %v2321_v48 }
   0xe   :  { %1343 = vmatpush.bf16.msra.mxu3 %v2470_v38  ;;  %v2776_v55 = vld [vmem:[%s4302_s1 + $0x210] sm:$0xf0]  ;;  %v2767_v56 = vld [vmem:[%s4302_s1 + $0x1cc] sm:$0xf]  ;;  %v2087_v57 = vld [vmem:[%s4302_s1 + $0x214] sm:$0xf0]  ;;  %v2550_v60 = vor.u32 %v2891_v52, %v2549_v51 }
   0xf   :  { %v2245_v58 = vld [vmem:[%s4302_s1 + $0x300] sm:$0xf]  ;;  %v2815_v59 = vld [vmem:[%s4302_s1 + $0x348] sm:$0xf0]  ;;  %v2086_v61 = vor.u32 %v2776_v55, %v2085_v53  ;;  %v2473_v62 = vld [vmem:[%s4302_s1 + $0x4c8] sm:$0xf]  ;;  %v2090_v1 = vor.u32 %v2767_v56, %v2087_v57 }
  0x10   :  { %1300 = vmatpush.bf16.msra.mxu0 %v2162_v46  ;;  %v2872_v63 = vld [vmem:[%s4302_s1 + $0x510] sm:$0xf0]  ;;  %v2399_v2 = vld [vmem:[%s4302_s1 + $0x47c] sm:$0xf0]  ;;  %v2009_v3 = vld [vmem:[%s4302_s1 + $0x130] sm:$0xf]  ;;  %v2246_v6 = vor.u32 %v2815_v59, %v2245_v58 }
  0x11   :  { %1349 = vmatpush.bf16.msrb.mxu1 %v2398_v39  ;;  %v2844_v0 = vld [vmem:[%s4302_s1 + $0x434] sm:$0xf]  ;;  %1326 = vmatpush.bf16.msra.mxu2 %v2166_v50  ;;  %v2757_v4 = vld [vmem:[%s4302_s1 + $0x178] sm:$0xf0]  ;;  %v2011_v8 = vld [vmem:[%s4302_s1 + $0x17c] sm:$0xf0]  ;;  %v2474_v11 = vor.u32 %v2872_v63, %v2473_v62 }
  0x12   :  { %1367 = vmatpush.bf16.msrb.mxu3 %v2626_v43  ;;  %v3083_v5 = vld [vmem:[#allocation1 + $0x9] sm:$0xff]  ;;  %v2748_v7 = vld [vmem:[%s4302_s1 + $0x134] sm:$0xf]  ;;  %v2010_v12 = vor.u32 %v2757_v4, %v2009_v3  ;;  %v2402_v13 = vor.u32 %v2844_v0, %v2399_v2  ;;  %v2825_v15 = vld [vmem:[%s4302_s1 + $0x39c] sm:$0xf] }
  0x13   :  { %2692 = vmatmul.msk.bf16.vlgmr.msra.gmra.mxu3 %vm1294_vm0, %v3083_v5  ;;  %v2169_v9 = vld [vmem:[%s4302_s1 + $0x268] sm:$0xf]  ;;  %v2796_v10 = vld [vmem:[%s4302_s1 + $0x2b0] sm:$0xf0]  ;;  %2691 = vmatmul.msk.bf16.vlgmr.msra.gmra.mxu1 %vm1294_vm0, %v3083_v5  ;;  %v2014_v14 = vor.u32 %v2748_v7, %v2011_v8  ;;  %v1933_v16 = vld [vmem:[%s4302_s1 + $0x98] sm:$0xf] }
  0x14   :  { %1301 = vmatpush.bf16.msra.mxu0 %v2086_v61  ;;  %v2738_v17 = vld [vmem:[%s4302_s1 + $0xe0] sm:$0xf0]  ;;  %v2170_v18 = vor.u32 %v2796_v10, %v2169_v9  ;;  %v2323_v19 = vld [vmem:[%s4302_s1 + $0x3e4] sm:$0xf0]  ;;  %v2729_v20 = vld [vmem:[%s4302_s1 + $0x9c] sm:$0xf] }
  0x15   :  { %1350 = vmatpush.bf16.msrb.mxu1 %v2322_v54  ;;  %1327 = vmatpush.bf16.msra.mxu2 %v2090_v1  ;;  %v1935_v21 = vld [vmem:[%s4302_s1 + $0xe4] sm:$0xf0]  ;;  %v2093_v22 = vld [vmem:[%s4302_s1 + $0x1d0] sm:$0xf]  ;;  %v2777_v23 = vld [vmem:[%s4302_s1 + $0x218] sm:$0xf0]  ;;  %v1934_v24 = vor.u32 %v2738_v17, %v1933_v16  ;;  %v2326_v26 = vor.u32 %v2825_v15, %v2323_v19 }
  0x16   :  { %1368 = vmatpush.bf16.msrb.mxu3 %v2550_v60  ;;  %v2806_v25 = vld [vmem:[%s4302_s1 + $0x304] sm:$0xf]  ;;  %v1938_v27 = vor.u32 %v2729_v20, %v1935_v21  ;;  %v2247_v28 = vld [vmem:[%s4302_s1 + $0x34c] sm:$0xf0]  ;;  %v1857_v29 = vld [vmem:[%s4302_s1] sm:$0xf]  ;;  %v2094_v31 = vor.u32 %v2777_v23, %v2093_v22 }
  0x17   :  { %v2719_v30 = vld [vmem:[%s4302_s1 + $0x48] sm:$0xf0]  ;;  %v2710_v32 = vld [vmem:[%s4302_s1 + $0x4] sm:$0xf]  ;;  %v1859_v33 = vld [vmem:[%s4302_s1 + $0x4c] sm:$0xf0]  ;;  %v2250_v41 = vor.u32 %v2806_v25, %v2247_v28 }
  0x18   :  { %1302 = vmatpush.bf16.msra.mxu0 %v2010_v12  ;;  %v2017_v34 = vld [vmem:[%s4302_s1 + $0x138] sm:$0xf]  ;;  %v2758_v35 = vld [vmem:[%s4302_s1 + $0x180] sm:$0xf0]  ;;  %v2901_v36 = vld [vmem:[%s4302_s1 + $0x5fc] sm:$0xf]  ;;  %v1858_v38 = vor.u32 %v2719_v30, %v1857_v29  ;;  %v1862_v42 = vor.u32 %v2710_v32, %v1859_v33 }
  0x19   :  { %1351 = vmatpush.bf16.msrb.mxu1 %v2246_v6  ;;  %1328 = vmatpush.bf16.msra.mxu2 %v2014_v14  ;;  %v2627_v37 = vld [vmem:[%s4302_s1 + $0x644] sm:$0xf0]  ;;  %v2405_v39 = vld [vmem:[%s4302_s1 + $0x438] sm:$0xf]  ;;  %v2854_v40 = vld [vmem:[%s4302_s1 + $0x480] sm:$0xf0]  ;;  %v2018_v43 = vor.u32 %v2758_v35, %v2017_v34 }
  0x1a   :  { %1369 = vmatpush.bf16.msrb.mxu3 %v2474_v11  ;;  %v2630_v44 = vor.u32 %v2901_v36, %v2627_v37  ;;  %v2787_v45 = vld [vmem:[%s4302_s1 + $0x26c] sm:$0xf]  ;;  %v2171_v46 = vld [vmem:[%s4302_s1 + $0x2b4] sm:$0xf0]  ;;  %v1941_v47 = vld [vmem:[%s4302_s1 + $0xa0] sm:$0xf]  ;;  %v2406_v48 = vor.u32 %v2854_v40, %v2405_v39 }
  0x1b   :  { %v2739_v49 = vld [vmem:[%s4302_s1 + $0xe8] sm:$0xf0]  ;;  %v2882_v50 = vld [vmem:[%s4302_s1 + $0x564] sm:$0xf]  ;;  %v2551_v51 = vld [vmem:[%s4302_s1 + $0x5ac] sm:$0xf0]  ;;  %v2174_v54 = vor.u32 %v2787_v45, %v2171_v46 }
  0x1c   :  { %1303 = vmatpush.bf16.msra.mxu0 %v1934_v24  ;;  %v2329_v52 = vld [vmem:[%s4302_s1 + $0x3a0] sm:$0xf]  ;;  %v2835_v53 = vld [vmem:[%s4302_s1 + $0x3e8] sm:$0xf0]  ;;  %v2768_v56 = vld [vmem:[%s4302_s1 + $0x1d4] sm:$0xf]  ;;  %v1942_v57 = vor.u32 %v2739_v49, %v1941_v47  ;;  %v2554_v58 = vor.u32 %v2882_v50, %v2551_v51 }
  0x1d   :  { %1352 = vmatpush.bf16.msrb.mxu1 %v2170_v18  ;;  %1329 = vmatpush.bf16.msra.mxu2 %v1938_v27  ;;  %v3185_v55 = vld [vmem:[#allocation1] sm:$0xff]  ;;  %v1865_v60 = vld [vmem:[%s4302_s1 + $0x8] sm:$0xf]  ;;  %v2720_v61 = vld [vmem:[%s4302_s1 + $0x50] sm:$0xf0]  ;;  %v2330_v62 = vor.u32 %v2835_v53, %v2329_v52 }
  0x1e   :  { %1375 = vmatpush.bf16.msra.mxu3 %v2402_v13  ;;  %v2095_v59 = vld [vmem:[%s4302_s1 + $0x21c] sm:$0xf0]  ;;  %v2863_v63 = vld [vmem:[%s4302_s1 + $0x4cc] sm:$0xf]  ;;  %v2475_v0 = vld [vmem:[%s4302_s1 + $0x514] sm:$0xf0]  ;;  %v1866_v9 = vor.u32 %v2720_v61, %v1865_v60 }
  0x1f   :  { %v2253_v1 = vld [vmem:[%s4302_s1 + $0x308] sm:$0xf]  ;;  %v2816_v2 = vld [vmem:[%s4302_s1 + $0x350] sm:$0xf0]  ;;  %v2633_v3 = vld [vmem:[%s4302_s1 + $0x600] sm:$0xf]  ;;  %v2098_v6 = vor.u32 %v2768_v56, %v2095_v59  ;;  %v2478_v10 = vor.u32 %v2863_v63, %v2475_v0 }
  0x20   :  { %1304 = vmatpush.bf16.msra.mxu0 %v1858_v38  ;;  %v2911_v4 = vld [vmem:[%s4302_s1 + $0x648] sm:$0xf0]  ;;  %v2845_v7 = vld [vmem:[%s4302_s1 + $0x43c] sm:$0xf]  ;;  %v2407_v8 = vld [vmem:[%s4302_s1 + $0x484] sm:$0xf0]  ;;  %v2254_v13 = vor.u32 %v2816_v2, %v2253_v1 }
  0x21   :  { %1353 = vmatpush.bf16.msrb.mxu1 %v2094_v31  ;;  %1330 = vmatpush.bf16.msra.mxu2 %v1862_v42  ;;  %v2749_v11 = vld [vmem:[%s4302_s1 + $0x13c] sm:$0xf]  ;;  %v2019_v12 = vld [vmem:[%s4302_s1 + $0x184] sm:$0xf0]  ;;  %v2634_v14 = vor.u32 %v2911_v4, %v2633_v3  ;;  %v2177_v15 = vld [vmem:[%s4302_s1 + $0x270] sm:$0xf]  ;;  %v2410_v16 = vor.u32 %v2845_v7, %v2407_v8 }
  0x22   :  { %1376 = vmatpush.bf16.msra.mxu3 %v2326_v26  ;;  %v2797_v17 = vld [vmem:[%s4302_s1 + $0x2b8] sm:$0xf0]  ;;  %v2557_v18 = vld [vmem:[%s4302_s1 + $0x568] sm:$0xf]  ;;  %v2892_v19 = vld [vmem:[%s4302_s1 + $0x5b0] sm:$0xf0]  ;;  %v2022_v20 = vor.u32 %v2749_v11, %v2019_v12 }
  0x23   :  { %2693 = vmatmul.msk.bf16.vlgmr.msrb.gmra.mxu3 %vm1294_vm0, %v3083_v5  ;;  %1305 = vmatmul.bf16.vlgmr.msra.gmra.mxu0 %v3185_v55  ;;  %v2826_v21 = vld [vmem:[%s4302_s1 + $0x3a4] sm:$0xf]  ;;  %v2331_v22 = vld [vmem:[%s4302_s1 + $0x3ec] sm:$0xf0]  ;;  %v2178_v25 = vor.u32 %v2797_v17, %v2177_v15  ;;  %v2558_v26 = vor.u32 %v2892_v19, %v2557_v18  ;;  %v2101_v27 = vld [vmem:[%s4302_s1 + $0x1d8] sm:$0xf] }
  0x24   :  { %1393 = vmatpush.bf16.msrb.mxu0 %v2630_v44  ;;  %1331 = vmatmul.bf16.vlgmr.msra.gmra.mxu2 %v3185_v55  ;;  %v2730_v23 = vld [vmem:[%s4302_s1 + $0xa4] sm:$0xf]  ;;  %v1943_v24 = vld [vmem:[%s4302_s1 + $0xec] sm:$0xf0]  ;;  %v2334_v29 = vor.u32 %v2826_v21, %v2331_v22  ;;  %v2873_v31 = vld [vmem:[%s4302_s1 + $0x518] sm:$0xf0] }
  0x25   :  { %1354 = vmatpush.bf16.msrb.mxu1 %v2018_v43  ;;  %1401 = vmatpush.bf16.msrb.mxu2 %v2406_v48  ;;  %v2778_v28 = vld [vmem:[%s4302_s1 + $0x220] sm:$0xf0]  ;;  %v2481_v30 = vld [vmem:[%s4302_s1 + $0x4d0] sm:$0xf]  ;;  %v2807_v32 = vld [vmem:[%s4302_s1 + $0x30c] sm:$0xf]  ;;  %v1946_v33 = vor.u32 %v2730_v23, %v1943_v24 }
  0x26   :  { %1377 = vmatpush.bf16.msra.mxu3 %v2250_v41  ;;  %v2255_v34 = vld [vmem:[%s4302_s1 + $0x354] sm:$0xf0]  ;;  %v2902_v35 = vld [vmem:[%s4302_s1 + $0x604] sm:$0xf]  ;;  %v2635_v36 = vld [vmem:[%s4302_s1 + $0x64c] sm:$0xf0]  ;;  %v2102_v39 = vor.u32 %v2778_v28, %v2101_v27  ;;  %v2482_v40 = vor.u32 %v2873_v31, %v2481_v30 }
  0x27   :  { %v2711_v37 = vld [vmem:[%s4302_s1 + $0xc] sm:$0xf]  ;;  %v1867_v38 = vld [vmem:[%s4302_s1 + $0x54] sm:$0xf0]  ;;  %v2413_v41 = vld [vmem:[%s4302_s1 + $0x440] sm:$0xf]  ;;  %v2258_v43 = vor.u32 %v2807_v32, %v2255_v34  ;;  %v2638_v44 = vor.u32 %v2902_v35, %v2635_v36 }
  0x28   :  { %1394 = vmatpush.bf16.msrb.mxu0 %v2554_v58  ;;  %v2855_v42 = vld [vmem:[%s4302_s1 + $0x488] sm:$0xf0]  ;;  %v2025_v45 = vld [vmem:[%s4302_s1 + $0x140] sm:$0xf]  ;;  %v1870_v47 = vor.u32 %v2711_v37, %v1867_v38  ;;  %v2788_v48 = vld [vmem:[%s4302_s1 + $0x274] sm:$0xf] }
  0x29   :  { %1355 = vmatpush.bf16.msrb.mxu1 %v1942_v57  ;;  %1402 = vmatpush.bf16.msrb.mxu2 %v2330_v62  ;;  %v2759_v46 = vld [vmem:[%s4302_s1 + $0x188] sm:$0xf0]  ;;  %v2179_v49 = vld [vmem:[%s4302_s1 + $0x2bc] sm:$0xf0]  ;;  %v2414_v50 = vor.u32 %v2855_v42, %v2413_v41  ;;  %v2559_v52 = vld [vmem:[%s4302_s1 + $0x5b4] sm:$0xf0] }
  0x2a   :  { %1378 = vmatpush.bf16.msra.mxu3 %v2174_v54  ;;  %v2883_v51 = vld [vmem:[%s4302_s1 + $0x56c] sm:$0xf]  ;;  %v2026_v53 = vor.u32 %v2759_v46, %v2025_v45  ;;  %v2337_v54 = vld [vmem:[%s4302_s1 + $0x3a8] sm:$0xf]  ;;  %v2836_v56 = vld [vmem:[%s4302_s1 + $0x3f0] sm:$0xf0]  ;;  %v2182_v57 = vor.u32 %v2788_v48, %v2179_v49 }
  0x2b   :  { %v1949_v58 = vld [vmem:[%s4302_s1 + $0xa8] sm:$0xf]  ;;  %v2740_v59 = vld [vmem:[%s4302_s1 + $0xf0] sm:$0xf0]  ;;  %v2562_v60 = vor.u32 %v2883_v51, %v2559_v52  ;;  %v2769_v61 = vld [vmem:[%s4302_s1 + $0x1dc] sm:$0xf]  ;;  %v2338_v63 = vor.u32 %v2836_v56, %v2337_v54 }
  0x2c   :  { %1395 = vmatpush.bf16.msrb.mxu0 %v2478_v10  ;;  %v2103_v62 = vld [vmem:[%s4302_s1 + $0x224] sm:$0xf0]  ;;  %v2864_v0 = vld [vmem:[%s4302_s1 + $0x4d4] sm:$0xf]  ;;  %v2483_v1 = vld [vmem:[%s4302_s1 + $0x51c] sm:$0xf0]  ;;  %v1950_v3 = vor.u32 %v2740_v59, %v1949_v58 }
  0x2d   :  { %1356 = vmatpush.bf16.msrb.mxu1 %v1866_v9  ;;  %1403 = vmatpush.bf16.msrb.mxu2 %v2254_v13  ;;  %v2261_v2 = vld [vmem:[%s4302_s1 + $0x310] sm:$0xf]  ;;  %v2817_v4 = vld [vmem:[%s4302_s1 + $0x358] sm:$0xf0]  ;;  %v2106_v8 = vor.u32 %v2769_v61, %v2103_v62  ;;  %v2750_v11 = vld [vmem:[%s4302_s1 + $0x144] sm:$0xf]  ;;  %v2486_v12 = vor.u32 %v2864_v0, %v2483_v1 }
  0x2e   :  { %1379 = vmatpush.bf16.msra.mxu3 %v2098_v6  ;;  %v2846_v6 = vld [vmem:[%s4302_s1 + $0x444] sm:$0xf]  ;;  %v2415_v7 = vld [vmem:[%s4302_s1 + $0x48c] sm:$0xf0]  ;;  %v2721_v10 = vld [vmem:[%s4302_s1 + $0x58] sm:$0xf0] }
  0x2f   :  { %v1873_v9 = vld [vmem:[%s4302_s1 + $0x10] sm:$0xf]  ;;  %v2912_v15 = vld [vmem:[%s4302_s1 + $0x650] sm:$0xf0]  ;;  %v2418_v17 = vor.u32 %v2846_v6, %v2415_v7  ;;  %v2185_v19 = vld [vmem:[%s4302_s1 + $0x278] sm:$0xf] }
  0x30   :  { %1427 = vmatpush.bf16.msra.mxu0 %v2410_v16  ;;  %1357 = vmatmul.bf16.vlgmr.msrb.gmra.mxu1 %v3185_v55  ;;  %v2027_v13 = vld [vmem:[%s4302_s1 + $0x18c] sm:$0xf0]  ;;  %v2262_v16 = vor.u32 %v2817_v4, %v2261_v2  ;;  %v1874_v18 = vor.u32 %v2721_v10, %v1873_v9  ;;  %v2827_v23 = vld [vmem:[%s4302_s1 + $0x3ac] sm:$0xf]  ;;  %v2339_v24 = vld [vmem:[%s4302_s1 + $0x3f4] sm:$0xf0] }
  0x31   :  { %1419 = vmatpush.bf16.msra.mxu1 %v2634_v14  ;;  %1404 = vmatpush.bf16.msrb.mxu2 %v2178_v25  ;;  %v2641_v14 = vld [vmem:[%s4302_s1 + $0x608] sm:$0xf]  ;;  %v2030_v21 = vor.u32 %v2750_v11, %v2027_v13  ;;  %v2731_v25 = vld [vmem:[%s4302_s1 + $0xac] sm:$0xf]  ;;  %v2565_v27 = vld [vmem:[%s4302_s1 + $0x570] sm:$0xf]  ;;  %v2342_v30 = vor.u32 %v2827_v23, %v2339_v24 }
  0x32   :  { %1380 = vmatpush.bf16.msra.mxu3 %v2022_v20  ;;  %v2798_v20 = vld [vmem:[%s4302_s1 + $0x2c0] sm:$0xf0]  ;;  %v2642_v22 = vor.u32 %v2912_v15, %v2641_v14  ;;  %v2893_v28 = vld [vmem:[%s4302_s1 + $0x5b8] sm:$0xf0]  ;;  %v2109_v31 = vld [vmem:[%s4302_s1 + $0x1e0] sm:$0xf] }
  0x33   :  { %2694 = vmatmul.msk.bf16.vlgmr.msrb.gmra.mxu0 %vm1294_vm0, %v3083_v5  ;;  %v2779_v32 = vld [vmem:[%s4302_s1 + $0x228] sm:$0xf0]  ;;  %v2566_v35 = vor.u32 %v2893_v28, %v2565_v27  ;;  %v2263_v36 = vld [vmem:[%s4302_s1 + $0x35c] sm:$0xf0]  ;;  %v2712_v37 = vld [vmem:[%s4302_s1 + $0x14] sm:$0xf] }
  0x34   :  { %1428 = vmatpush.bf16.msra.mxu0 %v2334_v29  ;;  %v2186_v29 = vor.u32 %v2798_v20, %v2185_v19  ;;  %v1875_v38 = vld [vmem:[%s4302_s1 + $0x5c] sm:$0xf0]  ;;  %v2903_v41 = vld [vmem:[%s4302_s1 + $0x60c] sm:$0xf]  ;;  %v2110_v42 = vor.u32 %v2779_v32, %v2109_v31  ;;  %v2856_v45 = vld [vmem:[%s4302_s1 + $0x490] sm:$0xf0] }
  0x35   :  { %1420 = vmatpush.bf16.msra.mxu1 %v2558_v26  ;;  %1405 = vmatpush.bf16.msrb.mxu2 %v2102_v39  ;;  %v1951_v26 = vld [vmem:[%s4302_s1 + $0xf4] sm:$0xf0]  ;;  %v2760_v48 = vld [vmem:[%s4302_s1 + $0x190] sm:$0xf0]  ;;  %v1878_v49 = vor.u32 %v2712_v37, %v1875_v38  ;;  %v2789_v51 = vld [vmem:[%s4302_s1 + $0x27c] sm:$0xf] }
  0x36   :  { %1381 = vmatpush.bf16.msra.mxu3 %v1946_v33  ;;  %v2808_v33 = vld [vmem:[%s4302_s1 + $0x314] sm:$0xf]  ;;  %v1954_v34 = vor.u32 %v2731_v25, %v1951_v26  ;;  %v2489_v39 = vld [vmem:[%s4302_s1 + $0x4d8] sm:$0xf]  ;;  %v2187_v52 = vld [vmem:[%s4302_s1 + $0x2c4] sm:$0xf0] }
  0x37   :  { %v2266_v46 = vor.u32 %v2808_v33, %v2263_v36  ;;  %v2884_v56 = vld [vmem:[%s4302_s1 + $0x574] sm:$0xf]  ;;  %v2567_v58 = vld [vmem:[%s4302_s1 + $0x5bc] sm:$0xf0]  ;;  %v2345_v59 = vld [vmem:[%s4302_s1 + $0x3b0] sm:$0xf]  ;;  %v2190_v61 = vor.u32 %v2789_v51, %v2187_v52 }
  0x38   :  { %1429 = vmatpush.bf16.msra.mxu0 %v2258_v43  ;;  %v2643_v43 = vld [vmem:[%s4302_s1 + $0x654] sm:$0xf0]  ;;  %v1957_v62 = vld [vmem:[%s4302_s1 + $0xb0] sm:$0xf]  ;;  %v2770_v0 = vld [vmem:[%s4302_s1 + $0x1e4] sm:$0xf]  ;;  %v2570_v2 = vor.u32 %v2884_v56, %v2567_v58 }
  0x39   :  { %1421 = vmatpush.bf16.msra.mxu1 %v2482_v40  ;;  %1406 = vmatpush.bf16.msrb.mxu2 %v2026_v53  ;;  %v2874_v40 = vld [vmem:[%s4302_s1 + $0x520] sm:$0xf0]  ;;  %v2646_v53 = vor.u32 %v2903_v41, %v2643_v43  ;;  %v2111_v1 = vld [vmem:[%s4302_s1 + $0x22c] sm:$0xf0]  ;;  %v1881_v4 = vld [vmem:[%s4302_s1 + $0x18] sm:$0xf] }
  0x3a   :  { %1382 = vmatpush.bf16.msra.mxu3 %v1870_v47  ;;  %v2033_v47 = vld [vmem:[%s4302_s1 + $0x148] sm:$0xf]  ;;  %v2722_v6 = vld [vmem:[%s4302_s1 + $0x60] sm:$0xf0]  ;;  %v2865_v7 = vld [vmem:[%s4302_s1 + $0x4dc] sm:$0xf] }
  0x3b   :  { %v2491_v9 = vld [vmem:[%s4302_s1 + $0x524] sm:$0xf0]  ;;  %v2269_v10 = vld [vmem:[%s4302_s1 + $0x318] sm:$0xf]  ;;  %v2818_v11 = vld [vmem:[%s4302_s1 + $0x360] sm:$0xf0] }
  0x3c   :  { %1430 = vmatpush.bf16.msra.mxu0 %v2182_v57  ;;  %v2034_v57 = vor.u32 %v2760_v48, %v2033_v47  ;;  %v2751_v13 = vld [vmem:[%s4302_s1 + $0x14c] sm:$0xf]  ;;  %v2423_v15 = vld [vmem:[%s4302_s1 + $0x494] sm:$0xf0]  ;;  %v2494_v19 = vor.u32 %v2865_v7, %v2491_v9  ;;  %v2270_v20 = vor.u32 %v2818_v11, %v2269_v10  ;;  %v2193_v23 = vld [vmem:[%s4302_s1 + $0x280] sm:$0xf] }
  0x3d   :  { %1445 = vmatpush.bf16.msrb.mxu1 %v2638_v44  ;;  %1383 = vmatmul.bf16.vlgmr.msra.gmra.mxu3 %v3185_v55  ;;  %v2421_v44 = vld [vmem:[%s4302_s1 + $0x448] sm:$0xf]  ;;  %v2847_v14 = vld [vmem:[%s4302_s1 + $0x44c] sm:$0xf]  ;;  %v2732_v27 = vld [vmem:[%s4302_s1 + $0xb4] sm:$0xf] }
  0x3e   :  { %1453 = vmatpush.bf16.msrb.mxu3 %v2414_v50  ;;  %1407 = vmatpush.bf16.msrb.mxu2 %v1950_v3  ;;  %v2490_v50 = vor.u32 %v2874_v40, %v2489_v39  ;;  %v2422_v54 = vor.u32 %v2856_v45, %v2421_v44  ;;  %v2799_v24 = vld [vmem:[%s4302_s1 + $0x2c8] sm:$0xf0]  ;;  %v2828_v28 = vld [vmem:[%s4302_s1 + $0x3b4] sm:$0xf]  ;;  %v2573_v31 = vld [vmem:[%s4302_s1 + $0x578] sm:$0xf] }
  0x3f   :  { %v2894_v32 = vld [vmem:[%s4302_s1 + $0x5c0] sm:$0xf0]  ;;  %v2194_v33 = vor.u32 %v2799_v24, %v2193_v23  ;;  %v2780_v36 = vld [vmem:[%s4302_s1 + $0x230] sm:$0xf0]  ;;  %v2713_v37 = vld [vmem:[%s4302_s1 + $0x1c] sm:$0xf] }
  0x40   :  { %1431 = vmatpush.bf16.msra.mxu0 %v2106_v8  ;;  %2695 = vmatmul.msk.bf16.vlgmr.msra.gmra.mxu1 %vm1294_vm0, %v3083_v5  ;;  %v2574_v39 = vor.u32 %v2894_v32, %v2573_v31  ;;  %v1883_v40 = vld [vmem:[%s4302_s1 + $0x64] sm:$0xf0]  ;;  %v2809_v41 = vld [vmem:[%s4302_s1 + $0x31c] sm:$0xf]  ;;  %v2497_v43 = vld [vmem:[%s4302_s1 + $0x4e0] sm:$0xf] }
  0x41   :  { %1446 = vmatpush.bf16.msrb.mxu1 %v2562_v60  ;;  %v2837_v60 = vld [vmem:[%s4302_s1 + $0x3f8] sm:$0xf0]  ;;  %v2875_v44 = vld [vmem:[%s4302_s1 + $0x528] sm:$0xf0]  ;;  %v2904_v45 = vld [vmem:[%s4302_s1 + $0x614] sm:$0xf] }
  0x42   :  { %1454 = vmatpush.bf16.msrb.mxu3 %v2338_v63  ;;  %1408 = vmatpush.bf16.msrb.mxu2 %v1874_v18  ;;  %v2741_v63 = vld [vmem:[%s4302_s1 + $0xf8] sm:$0xf0]  ;;  %v2346_v3 = vor.u32 %v2837_v60, %v2345_v59  ;;  %v2651_v47 = vld [vmem:[%s4302_s1 + $0x65c] sm:$0xf0]  ;;  %v2429_v48 = vld [vmem:[%s4302_s1 + $0x450] sm:$0xf] }
  0x43   :  { %v1958_v8 = vor.u32 %v2741_v63, %v1957_v62  ;;  %v2913_v18 = vld [vmem:[%s4302_s1 + $0x658] sm:$0xf0]  ;;  %v2041_v51 = vld [vmem:[%s4302_s1 + $0x150] sm:$0xf]  ;;  %v2790_v56 = vld [vmem:[%s4302_s1 + $0x284] sm:$0xf]  ;;  %v2654_v58 = vor.u32 %v2904_v45, %v2651_v47 }
  0x44   :  { %1432 = vmatpush.bf16.msra.mxu0 %v2030_v21  ;;  %v1882_v21 = vor.u32 %v2722_v6, %v1881_v4  ;;  %v2761_v52 = vld [vmem:[%s4302_s1 + $0x198] sm:$0xf0]  ;;  %v2575_v62 = vld [vmem:[%s4302_s1 + $0x5c4] sm:$0xf0]  ;;  %v2353_v63 = vld [vmem:[%s4302_s1 + $0x3b8] sm:$0xf] }
  0x45   :  { %1447 = vmatpush.bf16.msrb.mxu1 %v2486_v12  ;;  %1409 = vmatmul.bf16.vlgmr.msrb.gmra.mxu2 %v3185_v55  ;;  %v2114_v12 = vor.u32 %v2770_v0, %v2111_v1  ;;  %v2885_v60 = vld [vmem:[%s4302_s1 + $0x57c] sm:$0xf]  ;;  %v2838_v0 = vld [vmem:[%s4302_s1 + $0x400] sm:$0xf0]  ;;  %v2771_v4 = vld [vmem:[%s4302_s1 + $0x1ec] sm:$0xf] }
  0x46   :  { %1455 = vmatpush.bf16.msrb.mxu3 %v2262_v16  ;;  %1471 = vmatpush.bf16.msra.mxu2 %v2642_v22  ;;  %v2035_v16 = vld [vmem:[%s4302_s1 + $0x194] sm:$0xf0]  ;;  %v2426_v22 = vor.u32 %v2847_v14, %v2423_v15  ;;  %v2578_v7 = vor.u32 %v2885_v60, %v2575_v62  ;;  %v2866_v9 = vld [vmem:[%s4302_s1 + $0x4e4] sm:$0xf]  ;;  %v2499_v10 = vld [vmem:[%s4302_s1 + $0x52c] sm:$0xf0] }
  0x47   :  { %v2038_v25 = vor.u32 %v2751_v13, %v2035_v16  ;;  %v2119_v6 = vld [vmem:[%s4302_s1 + $0x234] sm:$0xf0]  ;;  %v2277_v11 = vld [vmem:[%s4302_s1 + $0x320] sm:$0xf]  ;;  %v2819_v13 = vld [vmem:[%s4302_s1 + $0x368] sm:$0xf0]  ;;  %v2502_v23 = vor.u32 %v2866_v9, %v2499_v10 }
  0x48   :  { %1433 = vmatpush.bf16.msra.mxu0 %v1954_v34  ;;  %v2848_v14 = vld [vmem:[%s4302_s1 + $0x454] sm:$0xf]  ;;  %v2431_v15 = vld [vmem:[%s4302_s1 + $0x49c] sm:$0xf0]  ;;  %v2122_v16 = vor.u32 %v2771_v4, %v2119_v6  ;;  %v2278_v24 = vor.u32 %v2819_v13, %v2277_v11  ;;  %v2829_v31 = vld [vmem:[%s4302_s1 + $0x3bc] sm:$0xf] }
  0x49   :  { %1479 = vmatpush.bf16.msra.mxu1 %v2418_v17  ;;  %v2649_v17 = vld [vmem:[%s4302_s1 + $0x610] sm:$0xf]  ;;  %v2355_v32 = vld [vmem:[%s4302_s1 + $0x404] sm:$0xf0]  ;;  %v2714_v45 = vld [vmem:[%s4302_s1 + $0x24] sm:$0xf] }
  0x4a   :  { %1456 = vmatpush.bf16.msrb.mxu3 %v2186_v29  ;;  %1472 = vmatpush.bf16.msra.mxu2 %v2566_v35  ;;  %v2650_v26 = vor.u32 %v2913_v18, %v2649_v17  ;;  %v2347_v29 = vld [vmem:[%s4302_s1 + $0x3fc] sm:$0xf0]  ;;  %v2117_v35 = vld [vmem:[%s4302_s1 + $0x1e8] sm:$0xf]  ;;  %v2723_v18 = vld [vmem:[%s4302_s1 + $0x68] sm:$0xf0] }
  0x4b   :  { %v2350_v34 = vor.u32 %v2828_v28, %v2347_v29  ;;  %v1889_v17 = vld [vmem:[%s4302_s1 + $0x20] sm:$0xf]  ;;  %v2800_v28 = vld [vmem:[%s4302_s1 + $0x2d0] sm:$0xf0]  ;;  %v2505_v47 = vld [vmem:[%s4302_s1 + $0x4e8] sm:$0xf] }
  0x4c   :  { %1434 = vmatpush.bf16.msra.mxu0 %v1878_v49  ;;  %v2857_v49 = vld [vmem:[%s4302_s1 + $0x498] sm:$0xf0]  ;;  %v2791_v60 = vld [vmem:[%s4302_s1 + $0x28c] sm:$0xf]  ;;  %v2772_v9 = vld [vmem:[%s4302_s1 + $0x1f4] sm:$0xf] }
  0x4d   :  { %1480 = vmatpush.bf16.msra.mxu1 %v2342_v30  ;;  %v1959_v30 = vld [vmem:[%s4302_s1 + $0xfc] sm:$0xf0]  ;;  %v2430_v59 = vor.u32 %v2857_v49, %v2429_v48  ;;  %v2876_v48 = vld [vmem:[%s4302_s1 + $0x530] sm:$0xf0]  ;;  %v2905_v49 = vld [vmem:[%s4302_s1 + $0x61c] sm:$0xf] }
  0x4e   :  { %1457 = vmatpush.bf16.msrb.mxu3 %v2110_v42  ;;  %1473 = vmatpush.bf16.msra.mxu2 %v2490_v50  ;;  %v1962_v38 = vor.u32 %v2732_v27, %v1959_v30  ;;  %v2271_v42 = vld [vmem:[%s4302_s1 + $0x364] sm:$0xf0]  ;;  %v2839_v4 = vld [vmem:[%s4302_s1 + $0x408] sm:$0xf0]  ;;  %v2127_v10 = vld [vmem:[%s4302_s1 + $0x23c] sm:$0xf0] }
  0x4f   :  { %1435 = vmatmul.bf16.vlgmr.msra.gmra.mxu0 %v3185_v55  ;;  %v2274_v50 = vor.u32 %v2809_v41, %v2271_v42  ;;  %v2201_v27 = vld [vmem:[%s4302_s1 + $0x288] sm:$0xf]  ;;  %v2810_v41 = vld [vmem:[%s4302_s1 + $0x324] sm:$0xf] }
  0x50   :  { %1497 = vmatpush.bf16.msrb.mxu0 %v2646_v53  ;;  %2696 = vmatmul.msk.bf16.vlgmr.msrb.gmra.mxu1 %vm1294_vm0, %v3083_v5  ;;  %v1886_v53 = vor.u32 %v2713_v37, %v1883_v40  ;;  %v2202_v37 = vor.u32 %v2800_v28, %v2201_v27  ;;  %v2781_v40 = vld [vmem:[%s4302_s1 + $0x238] sm:$0xf0]  ;;  %v1897_v13 = vld [vmem:[%s4302_s1 + $0x28] sm:$0xf] }
  0x51   :  { %1481 = vmatpush.bf16.msra.mxu1 %v2266_v46  ;;  %v2118_v46 = vor.u32 %v2780_v36, %v2117_v35  ;;  %v2581_v35 = vld [vmem:[%s4302_s1 + $0x580] sm:$0xf]  ;;  %v2895_v36 = vld [vmem:[%s4302_s1 + $0x5c8] sm:$0xf0] }
  0x52   :  { %1505 = vmatpush.bf16.msrb.mxu2 %v2422_v54  ;;  %1458 = vmatpush.bf16.msrb.mxu3 %v2034_v57  ;;  %v2498_v54 = vor.u32 %v2875_v44, %v2497_v43  ;;  %v2195_v57 = vld [vmem:[%s4302_s1 + $0x2cc] sm:$0xf0]  ;;  %v2582_v43 = vor.u32 %v2895_v36, %v2581_v35  ;;  %v2734_v35 = vld [vmem:[%s4302_s1 + $0xc4] sm:$0xf] }
  0x53   :  { %v2198_v1 = vor.u32 %v2790_v56, %v2195_v57  ;;  %v2279_v44 = vld [vmem:[%s4302_s1 + $0x36c] sm:$0xf0]  ;;  %v2049_v56 = vld [vmem:[%s4302_s1 + $0x158] sm:$0xf]  ;;  %v2762_v57 = vld [vmem:[%s4302_s1 + $0x1a0] sm:$0xf0] }
  0x54   :  { %1498 = vmatpush.bf16.msrb.mxu0 %v2570_v2  ;;  %v1965_v2 = vld [vmem:[%s4302_s1 + $0xb8] sm:$0xf]  ;;  %v2830_v36 = vld [vmem:[%s4302_s1 + $0x3c4] sm:$0xf] }
  0x55   :  { %1482 = vmatpush.bf16.msra.mxu1 %v2190_v61  ;;  %2697 = vmatmul.msk.bf16.vlgmr.msra.gmra.mxu2 %vm1294_vm0, %v3083_v5  ;;  %v2042_v61 = vor.u32 %v2761_v52, %v2041_v51  ;;  %v2659_v51 = vld [vmem:[%s4302_s1 + $0x664] sm:$0xf0]  ;;  %v2437_v52 = vld [vmem:[%s4302_s1 + $0x458] sm:$0xf] }
  0x56   :  { %1506 = vmatpush.bf16.msrb.mxu2 %v2346_v3  ;;  %1459 = vmatpush.bf16.msrb.mxu3 %v1958_v8  ;;  %v2742_v3 = vld [vmem:[%s4302_s1 + $0x100] sm:$0xf0]  ;;  %v2354_v8 = vor.u32 %v2838_v0, %v2353_v63  ;;  %v2662_v62 = vor.u32 %v2905_v49, %v2659_v51  ;;  %v2811_v49 = vld [vmem:[%s4302_s1 + $0x32c] sm:$0xf]  ;;  %v2513_v51 = vld [vmem:[%s4302_s1 + $0x4f0] sm:$0xf] }
  0x57   :  { %v2886_v0 = vld [vmem:[%s4302_s1 + $0x584] sm:$0xf] }
  0x58   :  { %1499 = vmatpush.bf16.msrb.mxu0 %v2494_v19  ;;  %v2752_v19 = vld [vmem:[%s4302_s1 + $0x154] sm:$0xf] }
  0x59   :  { %1483 = vmatpush.bf16.msra.mxu1 %v2114_v12  ;;  %v1966_v12 = vor.u32 %v2742_v3, %v1965_v2  ;;  %v2583_v2 = vld [vmem:[%s4302_s1 + $0x5cc] sm:$0xf0]  ;;  %v2361_v3 = vld [vmem:[%s4302_s1 + $0x3c0] sm:$0xf] }
  0x5a   :  { %1507 = vmatpush.bf16.msrb.mxu2 %v2270_v20  ;;  %1460 = vmatpush.bf16.msrb.mxu3 %v1882_v21  ;;  %v2043_v20 = vld [vmem:[%s4302_s1 + $0x19c] sm:$0xf0]  ;;  %v2657_v21 = vld [vmem:[%s4302_s1 + $0x618] sm:$0xf]  ;;  %v2586_v11 = vor.u32 %v2886_v0, %v2583_v2 }
  0x5b   :  { %v2046_v29 = vor.u32 %v2752_v19, %v2043_v20  ;;  %v2820_v19 = vld [vmem:[%s4302_s1 + $0x370] sm:$0xf0]  ;;  %v2130_v20 = vor.u32 %v2772_v9, %v2127_v10  ;;  %v2211_v0 = vld [vmem:[%s4302_s1 + $0x2dc] sm:$0xf0]  ;;  %v1981_v10 = vld [vmem:[%s4302_s1 + $0xc8] sm:$0xf] }
  0x5c   :  { %1531 = vmatpush.bf16.msra.mxu0 %v2426_v22  ;;  %v2914_v22 = vld [vmem:[%s4302_s1 + $0x660] sm:$0xf0] }
  0x5d   :  { %1484 = vmatpush.bf16.msra.mxu1 %v2038_v25  ;;  %1461 = vmatmul.bf16.vlgmr.msrb.gmra.mxu3 %v3185_v55  ;;  %v2434_v25 = vor.u32 %v2848_v14, %v2431_v15  ;;  %v2658_v30 = vor.u32 %v2914_v22, %v2657_v21  ;;  %v2724_v14 = vld [vmem:[%s4302_s1 + $0x70] sm:$0xf0]  ;;  %v2867_v15 = vld [vmem:[%s4302_s1 + $0x4ec] sm:$0xf]  ;;  %v2753_v21 = vld [vmem:[%s4302_s1 + $0x15c] sm:$0xf] }
  0x5e   :  { %1523 = vmatpush.bf16.msra.mxu3 %v2650_v26  ;;  %1508 = vmatpush.bf16.msrb.mxu2 %v2194_v33  ;;  %v1890_v26 = vor.u32 %v2723_v18, %v1889_v17  ;;  %v2733_v33 = vld [vmem:[%s4302_s1 + $0xbc] sm:$0xf]  ;;  %v2507_v17 = vld [vmem:[%s4302_s1 + $0x534] sm:$0xf0]  ;;  %v2285_v18 = vld [vmem:[%s4302_s1 + $0x328] sm:$0xf] }
  0x5f   :  { %2698 = vmatmul.msk.bf16.vlgmr.msrb.gmra.mxu0 %vm1294_vm0, %v3083_v5  ;;  %v2849_v22 = vld [vmem:[%s4302_s1 + $0x45c] sm:$0xf]  ;;  %v2510_v27 = vor.u32 %v2867_v15, %v2507_v17  ;;  %v2286_v28 = vor.u32 %v2820_v19, %v2285_v18  ;;  %v2515_v17 = vld [vmem:[%s4302_s1 + $0x53c] sm:$0xf0]  ;;  %v2293_v18 = vld [vmem:[%s4302_s1 + $0x330] sm:$0xf] }
  0x60   :  { %1532 = vmatpush.bf16.msra.mxu0 %v2350_v34  ;;  %v1967_v34 = vld [vmem:[%s4302_s1 + $0x104] sm:$0xf0] }
  0x61   :  { %1485 = vmatpush.bf16.msra.mxu1 %v1962_v38  ;;  %v2358_v38 = vor.u32 %v2829_v31, %v2355_v32  ;;  %v1970_v42 = vor.u32 %v2733_v33, %v1967_v34  ;;  %v2209_v31 = vld [vmem:[%s4302_s1 + $0x290] sm:$0xf]  ;;  %v2801_v32 = vld [vmem:[%s4302_s1 + $0x2d8] sm:$0xf0] }
  0x62   :  { %1524 = vmatpush.bf16.msra.mxu3 %v2574_v39  ;;  %1509 = vmatpush.bf16.msrb.mxu2 %v2118_v46  ;;  %v2125_v39 = vld [vmem:[%s4302_s1 + $0x1f0] sm:$0xf] }
  0x63   :  { %v1891_v46 = vld [vmem:[%s4302_s1 + $0x6c] sm:$0xf0] }
  0x64   :  { %1533 = vmatpush.bf16.msra.mxu0 %v2274_v50  ;;  %v2126_v50 = vor.u32 %v2781_v40, %v2125_v39  ;;  %v2589_v39 = vld [vmem:[%s4302_s1 + $0x588] sm:$0xf]  ;;  %v2896_v40 = vld [vmem:[%s4302_s1 + $0x5d0] sm:$0xf0] }
  0x65   :  { %1486 = vmatpush.bf16.msra.mxu1 %v1886_v53  ;;  %v2858_v53 = vld [vmem:[%s4302_s1 + $0x4a0] sm:$0xf0]  ;;  %v3891_v19 = vld [vmem:[#allocation1 + $0x9] sm:$0xff] }
  0x66   :  { %1525 = vmatpush.bf16.msra.mxu3 %v2498_v54  ;;  %1510 = vmatpush.bf16.msrb.mxu2 %v2042_v61  ;;  %v2282_v54 = vor.u32 %v2810_v41, %v2279_v44  ;;  %v2203_v61 = vld [vmem:[%s4302_s1 + $0x2d4] sm:$0xf0]  ;;  %v2438_v63 = vor.u32 %v2858_v53, %v2437_v52  ;;  %v2210_v41 = vor.u32 %v2801_v32, %v2209_v31  ;;  %v2782_v44 = vld [vmem:[%s4302_s1 + $0x240] sm:$0xf0]  ;;  %v2877_v52 = vld [vmem:[%s4302_s1 + $0x538] sm:$0xf0] }
  0x67   :  { %v2206_v6 = vor.u32 %v2791_v60, %v2203_v61  ;;  %v2906_v53 = vld [vmem:[%s4302_s1 + $0x624] sm:$0xf]  ;;  %v2763_v60 = vld [vmem:[%s4302_s1 + $0x1a8] sm:$0xf0] }
  0x68   :  { %1487 = vmatmul.bf16.vlgmr.msra.gmra.mxu1 %v3185_v55  ;;  %1534 = vmatpush.bf16.msra.mxu0 %v2198_v1  ;;  %v2050_v1 = vor.u32 %v2762_v57, %v2049_v56  ;;  %v2445_v56 = vld [vmem:[%s4302_s1 + $0x460] sm:$0xf]  ;;  %v2859_v57 = vld [vmem:[%s4302_s1 + $0x4a8] sm:$0xf0] }
  0x69   :  { %1549 = vmatpush.bf16.msrb.mxu1 %v2654_v58  ;;  %v1894_v58 = vor.u32 %v2714_v45, %v1891_v46  ;;  %v2715_v45 = vld [vmem:[%s4302_s1 + $0x2c] sm:$0xf]  ;;  %v2446_v2 = vor.u32 %v2859_v57, %v2445_v56  ;;  %v3976_v57 = vld [vmem:[#allocation1] sm:$0xff] }
  0x6a   :  { %1557 = vmatpush.bf16.msrb.mxu3 %v2430_v59  ;;  %1511 = vmatpush.bf16.msrb.mxu2 %v1966_v12  ;;  %v2506_v59 = vor.u32 %v2876_v48, %v2505_v47  ;;  %v2362_v12 = vor.u32 %v2839_v4, %v2361_v3  ;;  %v2590_v47 = vor.u32 %v2896_v40, %v2589_v39  ;;  %v1899_v48 = vld [vmem:[%s4302_s1 + $0x74] sm:$0xf0]  ;;  %v2887_v3 = vld [vmem:[%s4302_s1 + $0x58c] sm:$0xf] }
  0x6b   :  { %v1902_v61 = vor.u32 %v2715_v45, %v1899_v48  ;;  %v2371_v39 = vld [vmem:[%s4302_s1 + $0x414] sm:$0xf0]  ;;  %v2735_v40 = vld [vmem:[%s4302_s1 + $0xcc] sm:$0xf]  ;;  %v2812_v48 = vld [vmem:[%s4302_s1 + $0x334] sm:$0xf] }
  0x6c   :  { %1535 = vmatpush.bf16.msra.mxu0 %v2122_v16  ;;  %v2907_v56 = vld [vmem:[%s4302_s1 + $0x62c] sm:$0xf] }
  0x6d   :  { %1550 = vmatpush.bf16.msrb.mxu1 %v2578_v7  ;;  %2699 = vmatmul.msk.bf16.vlgmr.msra.gmra.mxu3 %vm1294_vm0, %v3083_v5  ;;  %v1973_v7 = vld [vmem:[%s4302_s1 + $0xc0] sm:$0xf] }
  0x6e   :  { %1558 = vmatpush.bf16.msrb.mxu3 %v2354_v8  ;;  %1512 = vmatpush.bf16.msrb.mxu2 %v1890_v26  ;;  %v2743_v8 = vld [vmem:[%s4302_s1 + $0x108] sm:$0xf0] }
  0x6f   :  { %v1974_v16 = vor.u32 %v2743_v8, %v1973_v7  ;;  %v2915_v26 = vld [vmem:[%s4302_s1 + $0x668] sm:$0xf0]  ;;  %v2369_v7 = vld [vmem:[%s4302_s1 + $0x3c8] sm:$0xf]  ;;  %v2840_v8 = vld [vmem:[%s4302_s1 + $0x410] sm:$0xf0] }
  0x70   :  { %1536 = vmatpush.bf16.msra.mxu0 %v2046_v29  ;;  %v1898_v29 = vor.u32 %v2724_v14, %v1897_v13  ;;  %v2135_v13 = vld [vmem:[%s4302_s1 + $0x244] sm:$0xf0]  ;;  %v2370_v15 = vor.u32 %v2840_v8, %v2369_v7 }
  0x71   :  { %1551 = vmatpush.bf16.msrb.mxu1 %v2502_v23  ;;  %1513 = vmatmul.bf16.vlgmr.msrb.gmra.mxu2 %v3185_v55  ;;  %v2439_v23 = vld [vmem:[%s4302_s1 + $0x4a4] sm:$0xf0] }
  0x72   :  { %1559 = vmatpush.bf16.msrb.mxu3 %v2278_v24  ;;  %1575 = vmatpush.bf16.msra.mxu2 %v2658_v30  ;;  %v2051_v24 = vld [vmem:[%s4302_s1 + $0x1a4] sm:$0xf0]  ;;  %v2442_v30 = vor.u32 %v2849_v22, %v2439_v23  ;;  %v2850_v22 = vld [vmem:[%s4302_s1 + $0x464] sm:$0xf]  ;;  %v2447_v23 = vld [vmem:[%s4302_s1 + $0x4ac] sm:$0xf0] }
  0x73   :  { %v2054_v33 = vor.u32 %v2753_v21, %v2051_v24  ;;  %v2821_v21 = vld [vmem:[%s4302_s1 + $0x378] sm:$0xf0]  ;;  %v2450_v32 = vor.u32 %v2850_v22, %v2447_v23 }
  0x74   :  { %1537 = vmatpush.bf16.msra.mxu0 %v1970_v42  ;;  %v2294_v31 = vor.u32 %v2821_v21, %v2293_v18  ;;  %v2143_v18 = vld [vmem:[%s4302_s1 + $0x24c] sm:$0xf0]  ;;  %v2869_v22 = vld [vmem:[%s4302_s1 + $0x4fc] sm:$0xf] }
  0x75   :  { %1583 = vmatpush.bf16.msra.mxu1 %v2434_v25  ;;  %v2665_v25 = vld [vmem:[%s4302_s1 + $0x620] sm:$0xf] }
  0x76   :  { %1560 = vmatpush.bf16.msrb.mxu3 %v2202_v37  ;;  %1576 = vmatpush.bf16.msra.mxu2 %v2582_v43  ;;  %v2666_v34 = vor.u32 %v2915_v26, %v2665_v25  ;;  %v2363_v37 = vld [vmem:[%s4302_s1 + $0x40c] sm:$0xf0]  ;;  %v2133_v43 = vld [vmem:[%s4302_s1 + $0x1f8] sm:$0xf]  ;;  %v2725_v26 = vld [vmem:[%s4302_s1 + $0x78] sm:$0xf0] }
  0x77   :  { %v2366_v42 = vor.u32 %v2830_v36, %v2363_v37  ;;  %v1905_v25 = vld [vmem:[%s4302_s1 + $0x30] sm:$0xf] }
  0x78   :  { %1538 = vmatpush.bf16.msra.mxu0 %v1894_v58  ;;  %2700 = vmatmul.msk.bf16.vlgmr.msrb.gmra.mxu1 %vm1294_vm0, %v3083_v5 }
  0x79   :  { %1584 = vmatpush.bf16.msra.mxu1 %v2358_v38  ;;  %v1975_v38 = vld [vmem:[%s4302_s1 + $0x10c] sm:$0xf0] }
  0x7a   :  { %1561 = vmatpush.bf16.msrb.mxu3 %v2126_v50  ;;  %1577 = vmatpush.bf16.msra.mxu2 %v2506_v59  ;;  %v1978_v46 = vor.u32 %v2734_v35, %v1975_v38  ;;  %v2287_v50 = vld [vmem:[%s4302_s1 + $0x374] sm:$0xf0]  ;;  %v2057_v59 = vld [vmem:[%s4302_s1 + $0x160] sm:$0xf]  ;;  %v2802_v35 = vld [vmem:[%s4302_s1 + $0x2e0] sm:$0xf0] }
  0x7b   :  { %1539 = vmatmul.bf16.vlgmr.msra.gmra.mxu0 %v3185_v55  ;;  %v2290_v58 = vor.u32 %v2811_v49, %v2287_v50  ;;  %v2058_v4 = vor.u32 %v2763_v60, %v2057_v59  ;;  %v2831_v38 = vld [vmem:[%s4302_s1 + $0x3cc] sm:$0xf]  ;;  %v2675_v59 = vld [vmem:[%s4302_s1 + $0x674] sm:$0xf0]  ;;  %v2453_v60 = vld [vmem:[%s4302_s1 + $0x468] sm:$0xf] }
  0x7c   :  { %1601 = vmatpush.bf16.msrb.mxu0 %v2662_v62  ;;  %v2514_v62 = vor.u32 %v2877_v52, %v2513_v51  ;;  %v2374_v45 = vor.u32 %v2831_v38, %v2371_v39  ;;  %v2295_v51 = vld [vmem:[%s4302_s1 + $0x37c] sm:$0xf0]  ;;  %v2716_v52 = vld [vmem:[%s4302_s1 + $0x34] sm:$0xf]  ;;  %v2678_v7 = vor.u32 %v2907_v56, %v2675_v59  ;;  %v2455_v38 = vld [vmem:[%s4302_s1 + $0x4b4] sm:$0xf0] }
  0x7d   :  { %1585 = vmatpush.bf16.msra.mxu1 %v2282_v54  ;;  %v2134_v54 = vor.u32 %v2782_v44, %v2133_v43  ;;  %v2897_v43 = vld [vmem:[%s4302_s1 + $0x5d8] sm:$0xf0]  ;;  %v1915_v59 = vld [vmem:[%s4302_s1 + $0x84] sm:$0xf0] }
  0x7e   :  { %1609 = vmatpush.bf16.msrb.mxu2 %v2438_v63  ;;  %1562 = vmatpush.bf16.msrb.mxu3 %v2050_v1  ;;  %v2792_v63 = vld [vmem:[%s4302_s1 + $0x294] sm:$0xf] }
  0x7f   :  { %v2214_v9 = vor.u32 %v2792_v63, %v2211_v0  ;;  %v2065_v63 = vld [vmem:[%s4302_s1 + $0x168] sm:$0xf]  ;;  %v2764_v0 = vld [vmem:[%s4302_s1 + $0x1b0] sm:$0xf0] }
  0x80   :  { %1602 = vmatpush.bf16.msrb.mxu0 %v2586_v11  ;;  %v2744_v11 = vld [vmem:[%s4302_s1 + $0x110] sm:$0xf0] }
  0x81   :  { %1586 = vmatpush.bf16.msra.mxu1 %v2206_v6  ;;  %2701 = vmatmul.msk.bf16.vlgmr.msra.gmra.mxu2 %vm1294_vm0, %v3083_v5  ;;  %v2667_v5 = vld [vmem:[%s4302_s1 + $0x66c] sm:$0xf0]  ;;  %v2591_v6 = vld [vmem:[%s4302_s1 + $0x5d4] sm:$0xf0] }
  0x82   :  { %1610 = vmatpush.bf16.msrb.mxu2 %v2362_v12  ;;  %1563 = vmatpush.bf16.msrb.mxu3 %v1974_v16  ;;  %v2670_v1 = vor.u32 %v2906_v53, %v2667_v5  ;;  %v2773_v12 = vld [vmem:[%s4302_s1 + $0x1fc] sm:$0xf]  ;;  %v2594_v14 = vor.u32 %v2887_v3, %v2591_v6  ;;  %v2868_v16 = vld [vmem:[%s4302_s1 + $0x4f4] sm:$0xf]  ;;  %v1907_v53 = vld [vmem:[%s4302_s1 + $0x7c] sm:$0xf0] }
  0x83   :  { %v2138_v24 = vor.u32 %v2773_v12, %v2135_v13  ;;  %v2878_v5 = vld [vmem:[%s4302_s1 + $0x540] sm:$0xf0]  ;;  %v2793_v3 = vld [vmem:[%s4302_s1 + $0x29c] sm:$0xf]  ;;  %v2377_v12 = vld [vmem:[%s4302_s1 + $0x3d0] sm:$0xf] }
  0x84   :  { %1603 = vmatpush.bf16.msrb.mxu0 %v2510_v27  ;;  %v2754_v27 = vld [vmem:[%s4302_s1 + $0x164] sm:$0xf]  ;;  %v2841_v13 = vld [vmem:[%s4302_s1 + $0x418] sm:$0xf0] }
  0x85   :  { %1587 = vmatpush.bf16.msra.mxu1 %v2130_v20  ;;  %v1982_v20 = vor.u32 %v2744_v11, %v1981_v10  ;;  %v2066_v10 = vor.u32 %v2764_v0, %v2065_v63  ;;  %v2599_v11 = vld [vmem:[%s4302_s1 + $0x5dc] sm:$0xf0]  ;;  %v2378_v21 = vor.u32 %v2841_v13, %v2377_v12  ;;  %v2813_v63 = vld [vmem:[%s4302_s1 + $0x33c] sm:$0xf]  ;;  %v2794_v13 = vld [vmem:[%s4302_s1 + $0x2a4] sm:$0xf] }
  0x86   :  { %1611 = vmatpush.bf16.msrb.mxu2 %v2286_v28  ;;  %1564 = vmatpush.bf16.msrb.mxu3 %v1898_v29  ;;  %v2059_v28 = vld [vmem:[%s4302_s1 + $0x1ac] sm:$0xf0]  ;;  %v2916_v29 = vld [vmem:[%s4302_s1 + $0x670] sm:$0xf0] }
  0x87   :  { %v2062_v36 = vor.u32 %v2754_v27, %v2059_v28  ;;  %v2822_v27 = vld [vmem:[%s4302_s1 + $0x380] sm:$0xf0] }
  0x88   :  { %1635 = vmatpush.bf16.msra.mxu0 %v2442_v30  ;;  %v2518_v30 = vor.u32 %v2868_v16, %v2515_v17  ;;  %v2745_v16 = vld [vmem:[%s4302_s1 + $0x118] sm:$0xf0]  ;;  %v2774_v17 = vld [vmem:[%s4302_s1 + $0x204] sm:$0xf] }
  0x89   :  { %1588 = vmatpush.bf16.msra.mxu1 %v2054_v33  ;;  %1565 = vmatmul.bf16.vlgmr.msrb.gmra.mxu3 %v3185_v55  ;;  %v1906_v33 = vor.u32 %v2725_v26, %v1905_v25  ;;  %v2523_v25 = vld [vmem:[%s4302_s1 + $0x544] sm:$0xf0]  ;;  %v2301_v26 = vld [vmem:[%s4302_s1 + $0x338] sm:$0xf]  ;;  %v2146_v28 = vor.u32 %v2774_v17, %v2143_v18  ;;  %v2227_v17 = vld [vmem:[%s4302_s1 + $0x2ec] sm:$0xf0] }
  0x8a   :  { %1627 = vmatpush.bf16.msra.mxu3 %v2666_v34  ;;  %1612 = vmatpush.bf16.msrb.mxu2 %v2210_v41  ;;  %v2217_v34 = vld [vmem:[%s4302_s1 + $0x298] sm:$0xf] }
  0x8b   :  { %2702 = vmatmul.msk.bf16.vlgmr.msrb.gmra.mxu0 %vm1294_vm0, %v3891_v19  ;;  %v1983_v41 = vld [vmem:[%s4302_s1 + $0x114] sm:$0xf0]  ;;  %v2218_v44 = vor.u32 %v2802_v35, %v2217_v34  ;;  %v2526_v35 = vor.u32 %v2869_v22, %v2523_v25 }
  0x8c   :  { %1636 = vmatpush.bf16.msra.mxu0 %v2366_v42  ;;  %v2597_v42 = vld [vmem:[%s4302_s1 + $0x590] sm:$0xf]  ;;  %v1986_v49 = vor.u32 %v2735_v40, %v1983_v41  ;;  %v2225_v40 = vld [vmem:[%s4302_s1 + $0x2a0] sm:$0xf]  ;;  %v2803_v41 = vld [vmem:[%s4302_s1 + $0x2e8] sm:$0xf0] }
  0x8d   :  { %1589 = vmatpush.bf16.msra.mxu1 %v1978_v46  ;;  %v2141_v46 = vld [vmem:[%s4302_s1 + $0x200] sm:$0xf]  ;;  %v2598_v50 = vor.u32 %v2897_v43, %v2597_v42  ;;  %v2385_v18 = vld [vmem:[%s4302_s1 + $0x3d8] sm:$0xf] }
  0x8e   :  { %1628 = vmatpush.bf16.msra.mxu3 %v2590_v47  ;;  %1613 = vmatpush.bf16.msrb.mxu2 %v2134_v54  ;;  %v2783_v47 = vld [vmem:[%s4302_s1 + $0x248] sm:$0xf0]  ;;  %v2521_v54 = vld [vmem:[%s4302_s1 + $0x4f8] sm:$0xf] }
  0x8f   :  { %v1997_v22 = vld [vmem:[%s4302_s1 + $0xd8] sm:$0xf] }
  0x90   :  { %1637 = vmatpush.bf16.msra.mxu0 %v2290_v58  ;;  %v2142_v58 = vor.u32 %v2783_v47, %v2141_v46  ;;  %v4000_v6 = vpop.f32.mrf.mxu1  ;;  %v1991_v46 = vld [vmem:[%s4302_s1 + $0x11c] sm:$0xf0]  ;;  %v2605_v47 = vld [vmem:[%s4302_s1 + $0x598] sm:$0xf] }
  0x91   :  { %1590 = vmatpush.bf16.msra.mxu1 %v1902_v61  ;;  %v2860_v61 = vld [vmem:[%s4302_s1 + $0x4b0] sm:$0xf0] }
  0x92   :  { %1629 = vmatpush.bf16.msra.mxu3 %v2514_v62  ;;  %1614 = vmatpush.bf16.msrb.mxu2 %v2058_v4  ;;  %v2298_v62 = vor.u32 %v2812_v48, %v2295_v51  ;;  %v2219_v4 = vld [vmem:[%s4302_s1 + $0x2e4] sm:$0xf0]  ;;  %v2454_v8 = vor.u32 %v2860_v61, %v2453_v60  ;;  %v2898_v48 = vld [vmem:[%s4302_s1 + $0x5e0] sm:$0xf0]  ;;  %v2379_v51 = vld [vmem:[%s4302_s1 + $0x41c] sm:$0xf0] }
  0x93   :  { %v2606_v56 = vor.u32 %v2898_v48, %v2605_v47  ;;  %v2529_v61 = vld [vmem:[%s4302_s1 + $0x500] sm:$0xf] }
  0x94   :  { %1591 = vmatmul.bf16.vlgmr.msra.gmra.mxu1 %v3185_v55  ;;  %1638 = vmatpush.bf16.msra.mxu0 %v2214_v9  ;;  %v2673_v55 = vld [vmem:[%s4302_s1 + $0x628] sm:$0xf]  ;;  %v2888_v9 = vld [vmem:[%s4302_s1 + $0x594] sm:$0xf]  ;;  %v2075_v48 = vld [vmem:[%s4302_s1 + $0x1bc] sm:$0xf0] }
  0x95   :  { %1653 = vmatpush.bf16.msrb.mxu1 %v2670_v1  ;;  %v2674_v37 = vor.u32 %v2916_v29, %v2673_v55  ;;  %v1910_v1 = vor.u32 %v2716_v52, %v1907_v53  ;;  %v1913_v55 = vld [vmem:[%s4302_s1 + $0x38] sm:$0xf]  ;;  %v2726_v29 = vld [vmem:[%s4302_s1 + $0x80] sm:$0xf0]  ;;  %v2149_v53 = vld [vmem:[%s4302_s1 + $0x208] sm:$0xf] }
  0x96   :  { %1661 = vmatpush.bf16.msrb.mxu3 %v2446_v2  ;;  %1615 = vmatpush.bf16.msrb.mxu2 %v1982_v20  ;;  %v2522_v2 = vor.u32 %v2878_v5, %v2521_v54  ;;  %v2602_v20 = vor.u32 %v2888_v9, %v2599_v11  ;;  %v4029_v23 = vpop.f32.mrf.mxu3  ;;  %v1914_v39 = vor.u32 %v2726_v29, %v1913_v55  ;;  %v2784_v54 = vld [vmem:[%s4302_s1 + $0x250] sm:$0xf0]  ;;  %v2775_v55 = vld [vmem:[%s4302_s1 + $0x20c] sm:$0xf]  ;;  %v2889_v29 = vld [vmem:[%s4302_s1 + $0x59c] sm:$0xf] }
  0x97   :  { %v2150_v0 = vor.u32 %v2784_v54, %v2149_v53  ;;  %v2613_v54 = vld [vmem:[%s4302_s1 + $0x5a0] sm:$0xf] }
  0x98   :  { %1639 = vmatpush.bf16.msra.mxu0 %v2138_v24  ;;  %v1321_v34 = vpop.f32.mrf.mxu1 }
  0x99   :  { %1654 = vmatpush.bf16.msrb.mxu1 %v2594_v14  ;;  %2703 = vmatmul.msk.bf16.vlgmr.msra.gmra.mxu3 %vm1294_vm0, %v3891_v19  ;;  %v2222_v14 = vor.u32 %v2793_v3, %v2219_v4  ;;  %v2861_v3 = vld [vmem:[%s4302_s1 + $0x4b8] sm:$0xf0]  ;;  %v2823_v34 = vld [vmem:[%s4302_s1 + $0x388] sm:$0xf0] }
  0x9a   :  { %1662 = vmatpush.bf16.msrb.mxu3 %v2370_v15  ;;  %1616 = vmatpush.bf16.msrb.mxu2 %v1906_v33  ;;  %v1989_v15 = vld [vmem:[%s4302_s1 + $0xd0] sm:$0xf]  ;;  %v2917_v33 = vld [vmem:[%s4302_s1 + $0x678] sm:$0xf0] }
  0x9b   :  { %v1990_v24 = vor.u32 %v2745_v16, %v1989_v15  ;;  %v2683_v15 = vld [vmem:[%s4302_s1 + $0x67c] sm:$0xf0] }
  0x9c   :  { %1640 = vmatpush.bf16.msra.mxu0 %v2062_v36  ;;  %v2302_v36 = vor.u32 %v2822_v27, %v2301_v26  ;;  %v2230_v27 = vor.u32 %v2794_v13, %v2227_v17  ;;  %v2766_v13 = vld [vmem:[%s4302_s1 + $0x1c0] sm:$0xf0] }
  0x9d   :  { %1655 = vmatpush.bf16.msrb.mxu1 %v2518_v30  ;;  %1617 = vmatmul.bf16.vlgmr.msrb.gmra.mxu2 %v3976_v57  ;;  %v2755_v30 = vld [vmem:[%s4302_s1 + $0x16c] sm:$0xf] }
  0x9e   :  { %1663 = vmatpush.bf16.msrb.mxu3 %v2294_v31  ;;  %1679 = vmatpush.bf16.msra.mxu2 %v2674_v37  ;;  %v2067_v31 = vld [vmem:[%s4302_s1 + $0x1b4] sm:$0xf0]  ;;  %v2851_v37 = vld [vmem:[%s4302_s1 + $0x46c] sm:$0xf]  ;;  %v1347_v52 = vpop.f32.mrf.mxu3 }
  0x9f   :  { %v2070_v42 = vor.u32 %v2755_v30, %v2067_v31  ;;  %v2607_v30 = vld [vmem:[%s4302_s1 + $0x5e4] sm:$0xf0] }
  0xa0   :  { %1641 = vmatpush.bf16.msra.mxu0 %v1986_v49  ;;  %v2226_v49 = vor.u32 %v2803_v41, %v2225_v40  ;;  %v4124_v4 = vpop.f32.mrf.mxu0  ;;  %v2689_v40 = vld [vmem:[%s4302_s1 + $0x638] sm:$0xf]  ;;  %v2918_v41 = vld [vmem:[%s4302_s1 + $0x680] sm:$0xf0] }
  0xa1   :  { %1687 = vmatpush.bf16.msra.mxu1 %v2450_v32  ;;  %v2681_v32 = vld [vmem:[%s4302_s1 + $0x630] sm:$0xf]  ;;  %v2690_v52 = vor.u32 %v2918_v41, %v2689_v40 }
  0xa2   :  { %1664 = vmatpush.bf16.msrb.mxu3 %v2218_v44  ;;  %1680 = vmatpush.bf16.msra.mxu2 %v2598_v50  ;;  %v2682_v43 = vor.u32 %v2917_v33, %v2681_v32  ;;  %v2736_v44 = vld [vmem:[%s4302_s1 + $0xd4] sm:$0xf]  ;;  %v2151_v32 = vld [vmem:[%s4302_s1 + $0x254] sm:$0xf0]  ;;  %v2309_v33 = vld [vmem:[%s4302_s1 + $0x340] sm:$0xf] }
  0xa3   :  { %v2832_v50 = vld [vmem:[%s4302_s1 + $0x3d4] sm:$0xf]  ;;  %v1994_v5 = vor.u32 %v2736_v44, %v1991_v46  ;;  %v2531_v46 = vld [vmem:[%s4302_s1 + $0x54c] sm:$0xf0] }
  0xa4   :  { %1642 = vmatpush.bf16.msra.mxu0 %v1910_v1  ;;  %2704 = vmatmul.msk.bf16.vlgmr.msrb.gmra.mxu1 %vm1294_vm0, %v3891_v19  ;;  %v2382_v60 = vor.u32 %v2832_v50, %v2379_v51  ;;  %v2303_v1 = vld [vmem:[%s4302_s1 + $0x384] sm:$0xf0]  ;;  %v2756_v44 = vld [vmem:[%s4302_s1 + $0x174] sm:$0xf] }
  0xa5   :  { %1688 = vmatpush.bf16.msra.mxu1 %v2374_v45  ;;  %v2458_v45 = vor.u32 %v2851_v37, %v2455_v38  ;;  %v2306_v11 = vor.u32 %v2813_v63, %v2303_v1  ;;  %v1921_v37 = vld [vmem:[%s4302_s1 + $0x40] sm:$0xf]  ;;  %v2727_v38 = vld [vmem:[%s4302_s1 + $0x88] sm:$0xf0]  ;;  %v2804_v50 = vld [vmem:[%s4302_s1 + $0x2f0] sm:$0xf0] }
  0xa6   :  { %1665 = vmatpush.bf16.msrb.mxu3 %v2142_v58  ;;  %1681 = vmatpush.bf16.msra.mxu2 %v2522_v2  ;;  %v2717_v58 = vld [vmem:[%s4302_s1 + $0x3c] sm:$0xf]  ;;  %v2461_v2 = vld [vmem:[%s4302_s1 + $0x470] sm:$0xf]  ;;  %v1922_v47 = vor.u32 %v2727_v38, %v1921_v37 }
  0xa7   :  { %1643 = vmatmul.bf16.vlgmr.msra.gmra.mxu0 %v3976_v57  ;;  %v1918_v9 = vor.u32 %v2717_v58, %v1915_v59  ;;  %v2462_v12 = vor.u32 %v2861_v3, %v2461_v2  ;;  %v4158_v25 = vpop.f32.mrf.mxu2  ;;  %v2078_v58 = vor.u32 %v2756_v44, %v2075_v48  ;;  %v2785_v63 = vld [vmem:[%s4302_s1 + $0x258] sm:$0xf0]  ;;  %v2537_v3 = vld [vmem:[%s4302_s1 + $0x508] sm:$0xf] }
  0xa8   :  { %1705 = vmatpush.bf16.msrb.mxu0 %v2678_v7  ;;  %v2073_v7 = vld [vmem:[%s4302_s1 + $0x170] sm:$0xf] }
  0xa9   :  { %1689 = vmatpush.bf16.msra.mxu1 %v2298_v62  ;;  %v2879_v62 = vld [vmem:[%s4302_s1 + $0x548] sm:$0xf0] }
  0xaa   :  { %1713 = vmatpush.bf16.msrb.mxu2 %v2454_v8  ;;  %1666 = vmatpush.bf16.msrb.mxu3 %v2066_v10  ;;  %v2765_v8 = vld [vmem:[%s4302_s1 + $0x1b8] sm:$0xf0]  ;;  %v2530_v10 = vor.u32 %v2879_v62, %v2529_v61  ;;  %v1999_v61 = vld [vmem:[%s4302_s1 + $0x124] sm:$0xf0]  ;;  %v2157_v62 = vld [vmem:[%s4302_s1 + $0x210] sm:$0xf] }
  0xab   :  { %v2074_v16 = vor.u32 %v2765_v8, %v2073_v7  ;;  %v2880_v7 = vld [vmem:[%s4302_s1 + $0x550] sm:$0xf0] }
  0xac   :  { %1706 = vmatpush.bf16.msrb.mxu0 %v2602_v20  ;;  %v2842_v20 = vld [vmem:[%s4302_s1 + $0x420] sm:$0xf0] }
  0xad   :  { %1690 = vmatpush.bf16.msra.mxu1 %v2222_v14  ;;  %2705 = vmatmul.msk.bf16.vlgmr.msra.gmra.mxu2 %vm1294_vm0, %v3891_v19  ;;  %v2908_v14 = vld [vmem:[%s4302_s1 + $0x634] sm:$0xf] }
  0xae   :  { %1714 = vmatpush.bf16.msrb.mxu2 %v2378_v21  ;;  %1667 = vmatpush.bf16.msrb.mxu3 %v1990_v24  ;;  %v4150_v21 = vpop.f32.mrf.mxu3  ;;  %v2746_v24 = vld [vmem:[%s4302_s1 + $0x120] sm:$0xf0]  ;;  %v2686_v26 = vor.u32 %v2908_v14, %v2683_v15  ;;  %v2538_v14 = vor.u32 %v2880_v7, %v2537_v3  ;;  %v1346_v15 = vadd.f32 %v4029_v23, %v4158_v25 }
  0xaf   :  { %v1998_v31 = vor.u32 %v2746_v24, %v1997_v22 }
  0xb0   :  { %1707 = vmatpush.bf16.msrb.mxu0 %v2526_v35  ;;  %v1308_v35 = vpop.f32.mrf.mxu0 }
  0xb1   :  { %1691 = vmatpush.bf16.msra.mxu1 %v2146_v28  ;;  %v2386_v28 = vor.u32 %v2842_v20, %v2385_v18  ;;  %v2005_v18 = vld [vmem:[%s4302_s1 + $0xe0] sm:$0xf]  ;;  %v2747_v20 = vld [vmem:[%s4302_s1 + $0x128] sm:$0xf0] }
  0xb2   :  { %1715 = vmatpush.bf16.msrb.mxu2 %v2302_v36  ;;  %1668 = vmatpush.bf16.msrb.mxu3 %v1914_v39  ;;  %v1358_v36 = vpop.f32.mrf.mxu1  ;;  %v2610_v39 = vor.u32 %v2889_v29, %v2607_v30  ;;  %v2728_v29 = vld [vmem:[%s4302_s1 + $0x90] sm:$0xf0] }
  0xb3   :  { %v1372_v22 = vadd.f32 %v4150_v21, %v1358_v36  ;;  %v1929_v21 = vld [vmem:[%s4302_s1 + $0x48] sm:$0xf] }
  0xb4   :  { %1739 = vmatpush.bf16.msra.mxu0 %v2458_v45  ;;  %v2870_v45 = vld [vmem:[%s4302_s1 + $0x504] sm:$0xf] }
  0xb5   :  { %1692 = vmatpush.bf16.msra.mxu1 %v2070_v42  ;;  %1669 = vmatmul.bf16.vlgmr.msrb.gmra.mxu3 %v3976_v57  ;;  %v2154_v42 = vor.u32 %v2775_v55, %v2151_v32  ;;  %v2534_v53 = vor.u32 %v2870_v45, %v2531_v46  ;;  %v2006_v55 = vor.u32 %v2747_v20, %v2005_v18  ;;  %v1811_v30 = vrot.slane %v1372_v22, 4 }
  0xb6   :  { %1731 = vmatpush.bf16.msra.mxu3 %v2682_v43  ;;  %1716 = vmatpush.bf16.msrb.mxu2 %v2226_v49  ;;  %v2310_v43 = vor.u32 %v2823_v34, %v2309_v33  ;;  %v2233_v49 = vld [vmem:[%s4302_s1 + $0x2a8] sm:$0xf]  ;;  %v1373_v51 = vpop.f32.mrf.mxu3  ;;  %v1930_v32 = vor.u32 %v2728_v29, %v1929_v21 }
  0xb7   :  { %2706 = vmatmul.msk.bf16.vlgmr.msrb.gmra.mxu0 %vm1294_vm0, %v3891_v19  ;;  %v2234_v59 = vor.u32 %v2804_v50, %v2233_v49 }
  0xb8   :  { %1740 = vmatpush.bf16.msra.mxu0 %v2382_v60  ;;  %v2737_v60 = vld [vmem:[%s4302_s1 + $0xdc] sm:$0xf]  ;;  %v1397_v1 = vpop.f32.mrf.mxu0 }
  0xb9   :  { %1693 = vmatpush.bf16.msra.mxu1 %v1994_v5  ;;  %v2899_v5 = vld [vmem:[%s4302_s1 + $0x5e8] sm:$0xf0]  ;;  %v2002_v8 = vor.u32 %v2737_v60, %v1999_v61 }
  0xba   :  { %1732 = vmatpush.bf16.msra.mxu3 %v2606_v56  ;;  %1717 = vmatpush.bf16.msrb.mxu2 %v2150_v0  ;;  %v1334_v56 = vpop.f32.mrf.mxu2  ;;  %v1360_v0 = vpop.f32.mrf.mxu1  ;;  %v2614_v2 = vor.u32 %v2899_v5, %v2613_v54 }
  0xbc   :  { %1741 = vmatpush.bf16.msra.mxu0 %v2306_v11  ;;  %v1923_v11 = vld [vmem:[%s4302_s1 + $0x8c] sm:$0xf0] }
  0xbd   :  { %1694 = vmatpush.bf16.msra.mxu1 %v1918_v9  ;;  %v2158_v9 = vor.u32 %v2785_v63, %v2157_v62 }
  0xbe   :  { %1733 = vmatpush.bf16.msra.mxu3 %v2530_v10  ;;  %1718 = vmatpush.bf16.msrb.mxu2 %v2074_v16  ;;  %v2718_v10 = vld [vmem:[%s4302_s1 + $0x44] sm:$0xf] }
  0xbf   :  { %v1926_v16 = vor.u32 %v2718_v10, %v1923_v11 }
  0xc0   :  { %1695 = vmatmul.bf16.vlgmr.msra.gmra.mxu1 %v3976_v57  ;;  %1742 = vmatpush.bf16.msra.mxu0 %v2230_v27  ;;  %v1399_v24 = vpop.f32.mrf.mxu0  ;;  %v1384_v23 = vpop.f32.mrf.mxu3  ;;  %v1320_v27 = vadd.f32 %v4000_v6, %v4124_v4 }
  0xc1   :  { %1757 = vmatpush.bf16.msrb.mxu1 %v2686_v26  ;;  %v1810_v26 = vrot.slane %v1346_v15, 6 }
  0xc2   :  { %1765 = vmatpush.bf16.msrb.mxu3 %v2462_v12  ;;  %1719 = vmatpush.bf16.msrb.mxu2 %v1998_v31  ;;  %v2081_v12 = vld [vmem:[%s4302_s1 + $0x178] sm:$0xf]  ;;  %v1423_v25 = vpop.f32.mrf.mxu1 }
  0xc3   :  { %v2082_v17 = vor.u32 %v2766_v13, %v2081_v12  ;;  %v1825_v6 = vsel %vm1824_vm1, %v1320_v27, %v1810_v26 }
  0xc4   :  { %1743 = vmatpush.bf16.msra.mxu0 %v2154_v42 }
  0xc5   :  { %1758 = vmatpush.bf16.msrb.mxu1 %v2610_v39  ;;  %2707 = vmatmul.msk.bf16.vlgmr.msra.gmra.mxu3 %vm1294_vm0, %v3891_v19 }
  0xc6   :  { %1766 = vmatpush.bf16.msrb.mxu3 %v2386_v28  ;;  %1720 = vmatpush.bf16.msrb.mxu2 %v1922_v47  ;;  %v1398_v28 = vadd.f32 %v1397_v1, %v1384_v23 }
  0xc8   :  { %1744 = vmatpush.bf16.msra.mxu0 %v2078_v58  ;;  %v1812_v31 = vrot.slane %v1398_v28, 2  ;;  %v1386_v35 = vpop.f32.mrf.mxu3  ;;  %v1410_v36 = vpop.f32.mrf.mxu2 }
  0xc9   :  { %1759 = vmatpush.bf16.msrb.mxu1 %v2534_v53  ;;  %1721 = vmatmul.bf16.vlgmr.msrb.gmra.mxu2 %v3976_v57  ;;  %v1424_v48 = vadd.f32 %v1423_v25, %v1410_v36 }
  0xca   :  { %1767 = vmatpush.bf16.msrb.mxu3 %v2310_v43  ;;  %1783 = vmatpush.bf16.msra.mxu2 %v2690_v52  ;;  %v1827_v4 = vsel %vm1826_vm2, %v1811_v30, %v1812_v31  ;;  %v1425_v34 = vpop.f32.mrf.mxu1 }
  0xcb   :  { %v1829_v33 = vsel %vm1828_vm3, %v1825_v6, %v1827_v4 }
  0xcc   :  { %1745 = vmatpush.bf16.msra.mxu0 %v2002_v8  ;;  %1846 = vst [vmem:[%s4304_s2] sm:$0xff] %v1829_v33  ;;  %v1436_v37 = vpop.f32.mrf.mxu0 }
  0xce   :  { %1768 = vmatpush.bf16.msrb.mxu3 %v2234_v59  ;;  %1784 = vmatpush.bf16.msra.mxu2 %v2614_v2 }
  0xd0   :  { %2708 = vmatmul.msk.bf16.vlgmr.msrb.gmra.mxu1 %vm1294_vm0, %v3891_v19  ;;  %1746 = vmatpush.bf16.msra.mxu0 %v1926_v16  ;;  %v1412_v39 = vpop.f32.mrf.mxu2 }
  0xd2   :  { %1769 = vmatpush.bf16.msrb.mxu3 %v2158_v9  ;;  %1785 = vmatpush.bf16.msra.mxu2 %v2538_v14  ;;  %v1449_v38 = vpop.f32.mrf.mxu1 }
  0xd3   :  { %1747 = vmatmul.bf16.vlgmr.msra.gmra.mxu0 %v3976_v57  ;;  %v1450_v43 = vadd.f32 %v1449_v38, %v1436_v37 }
  0xd4   :  { %v1438_v40 = vpop.f32.mrf.mxu0 }
  0xd5   :  { %v1813_v49 = vrot.slane %v1450_v43, 6 }
  0xd6   :  { %1770 = vmatpush.bf16.msrb.mxu3 %v2082_v17 }
  0xd7   :  { %v1830_v53 = vsel %vm1824_vm1, %v1424_v48, %v1813_v49 }
  0xd8   :  { %v1475_v42 = vpop.f32.mrf.mxu2 }
  0xd9   :  { %2709 = vmatmul.msk.bf16.vlgmr.msra.gmra.mxu2 %vm1294_vm0, %v3891_v19 }
  0xda   :  { %1771 = vmatpush.bf16.msrb.mxu3 %v2006_v55  ;;  %v1451_v41 = vpop.f32.mrf.mxu1 }
  0xdc   :  { %v1501_v46 = vpop.f32.mrf.mxu0 }
  0xde   :  { %1772 = vmatpush.bf16.msrb.mxu3 %v1930_v32 }
  0xe0   :  { %v1462_v44 = vpop.f32.mrf.mxu3  ;;  %v1477_v19 = vpop.f32.mrf.mxu2 }
  0xe1   :  { %1773 = vmatmul.bf16.vlgmr.msrb.gmra.mxu3 %v3976_v57  ;;  %v1476_v45 = vadd.f32 %v1475_v42, %v1462_v44 }
  0xe3   :  { %v1814_v50 = vrot.slane %v1476_v45, 4 }
  0xe4   :  { %v1503_v56 = vpop.f32.mrf.mxu0 }
  0xe5   :  { %v1488_v47 = vpop.f32.mrf.mxu1 }
  0xe6   :  { %v1502_v51 = vadd.f32 %v1501_v46, %v1488_v47 }
  0xe8   :  { %v1815_v52 = vrot.slane %v1502_v51, 2  ;;  %v1464_v54 = vpop.f32.mrf.mxu3 }
  0xea   :  { %v1831_v57 = vsel %vm1826_vm2, %v1814_v50, %v1815_v52 }
  0xeb   :  { %v1832_v5 = vsel %vm1828_vm3, %v1830_v53, %v1831_v57 }
  0xec   :  { %1847 = vst [vmem:[%s4304_s2 + $0x8] sm:$0xff] %v1832_v5 }
  0xed   :  { %v1490_v58 = vpop.f32.mrf.mxu1 }
  0xf0   :  { %v1527_v59 = vpop.f32.mrf.mxu3 }
  0xf4   :  { %v1514_v60 = vpop.f32.mrf.mxu2 }
  0xf5   :  { %v1553_v61 = vpop.f32.mrf.mxu1  ;;  %v1528_v12 = vadd.f32 %v1527_v59, %v1514_v60 }
  0xf8   :  { %v1540_v62 = vpop.f32.mrf.mxu0  ;;  %v1529_v63 = vpop.f32.mrf.mxu3 }
  0xf9   :  { %v1554_v7 = vadd.f32 %v1553_v61, %v1540_v62 }
  0xfb   :  { %v1816_v13 = vrot.slane %v1554_v7, 6 }
  0xfc   :  { %v1516_v0 = vpop.f32.mrf.mxu2 }
  0xfd   :  { %v1555_v1 = vpop.f32.mrf.mxu1  ;;  %v1833_v18 = vsel %vm1824_vm1, %v1528_v12, %v1816_v13 }
 0x100   :  { %v1542_v2 = vpop.f32.mrf.mxu0 }
 0x104   :  { %v1579_v3 = vpop.f32.mrf.mxu2 }
 0x108   :  { %v1605_v10 = vpop.f32.mrf.mxu0 }
 0x10c   :  { %v1566_v8 = vpop.f32.mrf.mxu3  ;;  %v1581_v17 = vpop.f32.mrf.mxu2 }
 0x10d   :  { %v1580_v9 = vadd.f32 %v1579_v3, %v1566_v8 }
 0x10f   :  { %v1817_v14 = vrot.slane %v1580_v9, 4 }
 0x110   :  { %v1607_v23 = vpop.f32.mrf.mxu0 }
 0x111   :  { %v1592_v11 = vpop.f32.mrf.mxu1 }
 0x112   :  { %v1606_v15 = vadd.f32 %v1605_v10, %v1592_v11 }
 0x114   :  { %v1818_v16 = vrot.slane %v1606_v15, 2  ;;  %v1568_v22 = vpop.f32.mrf.mxu3 }
 0x116   :  { %v1834_v20 = vsel %vm1826_vm2, %v1817_v14, %v1818_v16 }
 0x117   :  { %v1835_v24 = vsel %vm1828_vm3, %v1833_v18, %v1834_v20 }
 0x118   :  { %1848 = vst [vmem:[%s4304_s2 + $0x10] sm:$0xff] %v1835_v24 }
 0x119   :  { %v1594_v25 = vpop.f32.mrf.mxu1 }
 0x11c   :  { %v1631_v26 = vpop.f32.mrf.mxu3 }
 0x120   :  { %v1618_v27 = vpop.f32.mrf.mxu2 }
 0x121   :  { %v1657_v28 = vpop.f32.mrf.mxu1  ;;  %v1632_v36 = vadd.f32 %v1631_v26, %v1618_v27 }
 0x124   :  { %v1644_v55 = vpop.f32.mrf.mxu0  ;;  %v1633_v21 = vpop.f32.mrf.mxu3 }
 0x125   :  { %v1658_v4 = vadd.f32 %v1657_v28, %v1644_v55 }
 0x127   :  { %v1819_v37 = vrot.slane %v1658_v4, 6 }
 0x128   :  { %v1620_v29 = vpop.f32.mrf.mxu2 }
 0x129   :  { %v1659_v30 = vpop.f32.mrf.mxu1  ;;  %v1836_v42 = vsel %vm1824_vm1, %v1632_v36, %v1819_v37 }
 0x12c   :  { %v1646_v31 = vpop.f32.mrf.mxu0 }
 0x130   :  { %v1683_v6 = vpop.f32.mrf.mxu2 }
 0x134   :  { %v1709_v34 = vpop.f32.mrf.mxu0 }
 0x138   :  { %v1670_v32 = vpop.f32.mrf.mxu3  ;;  %v1685_v40 = vpop.f32.mrf.mxu2 }
 0x139   :  { %v1684_v33 = vadd.f32 %v1683_v6, %v1670_v32 }
 0x13b   :  { %v1820_v38 = vrot.slane %v1684_v33, 4 }
 0x13c   :  { %v1711_v46 = vpop.f32.mrf.mxu0 }
 0x13d   :  { %v1696_v35 = vpop.f32.mrf.mxu1 }
 0x13e   :  { %v1710_v39 = vadd.f32 %v1709_v34, %v1696_v35 }
 0x140   :  { %v1821_v41 = vrot.slane %v1710_v39, 2  ;;  %v1672_v44 = vpop.f32.mrf.mxu3 }
 0x142   :  { %v1837_v43 = vsel %vm1826_vm2, %v1820_v38, %v1821_v41 }
 0x143   :  { %v1838_v45 = vsel %vm1828_vm3, %v1836_v42, %v1837_v43 }
 0x144   :  { %1849 = vst [vmem:[%s4304_s2 + $0x18] sm:$0xff] %v1838_v45 }
 0x145   :  { %v1698_v47 = vpop.f32.mrf.mxu1 }
 0x148   :  { %v1735_v48 = vpop.f32.mrf.mxu3 }
 0x14c   :  { %v1722_v50 = vpop.f32.mrf.mxu2 }
 0x14d   :  { %v1761_v49 = vpop.f32.mrf.mxu1  ;;  %v1736_v60 = vadd.f32 %v1735_v48, %v1722_v50 }
 0x150   :  { %v1748_v51 = vpop.f32.mrf.mxu0  ;;  %v1737_v52 = vpop.f32.mrf.mxu3 }
 0x151   :  { %v1762_v54 = vadd.f32 %v1761_v49, %v1748_v51 }
 0x153   :  { %v1822_v56 = vrot.slane %v1762_v54, 6 }
 0x154   :  { %v1724_v53 = vpop.f32.mrf.mxu2 }
 0x155   :  { %v1763_v19 = vpop.f32.mrf.mxu1  ;;  %v1839_v62 = vsel %vm1824_vm1, %v1736_v60, %v1822_v56 }
 0x158   :  { %v1750_v57 = vpop.f32.mrf.mxu0 }
 0x15c   :  { %v1787_v5 = vpop.f32.mrf.mxu2 }
 0x164   :  { %v1774_v58 = vpop.f32.mrf.mxu3  ;;  %v1789_v0 = vpop.f32.mrf.mxu2 }
 0x165   :  { %v1788_v59 = vadd.f32 %v1787_v5, %v1774_v58 }
 0x167   :  { %v1823_v61 = vrot.slane %v1788_v59, 4 }
 0x169   :  { %v1840_v63 = vsel %vm1828_vm3, %v1839_v62, %v1823_v61 }
 0x16a   :  { %1850 = vst [vmem:[%s4304_s2 + $0x20] sm:$0x3f] %v1840_v63 }
 0x16c   :  { %v1776_v1 = vpop.f32.mrf.mxu3 }

</bundles_post_ra>
